<compile_context>
chip_gen: v7x
topology: tpu7x:2x2x1
jax: 0.10.0
libtpu: 0.0.40
codegen_flags: <defaults>
</compile_context>

<pallas_src>
import functools
import math

import jax
import jax.numpy as jnp
from jax.experimental import pallas as pl
from jax.experimental.pallas import tpu as pltpu

# Class-balance weights hard-coded in OhemCrossEntropy2d.__init__ (19 classes).
CLASS_WEIGHTS = (0.8373, 0.918, 0.866, 1.0345, 1.0166, 0.9969, 0.9754, 1.0489,
                 0.8786, 1.0023, 0.9539, 0.9843, 1.1116, 0.9037, 1.0865, 1.0955,
                 1.0865, 1.1529, 1.0507)


def _round_up(x, m):
    return ((x + m - 1) // m) * m


def _ohem_ce_kernel(logits_ref, labels_ref, num_ref, den_ref, *,
                    ignore_label, nll_thresh, class_weights):
    # logits_ref: (C, TH, TW) input dtype     labels_ref: (TH, TW) int32
    # num_ref / den_ref: (TH, TW) f32 per-batch elementwise accumulators,
    # resident across both pixel-block grid axes.
    @pl.when(jnp.logical_and(pl.program_id(1) == 0, pl.program_id(2) == 0))
    def _():
        num_ref[...] = jnp.zeros_like(num_ref)
        den_ref[...] = jnp.zeros_like(den_ref)

    labels = labels_ref[...]                       # (TH, TW) int32
    c = logits_ref.shape[0]

    # Class max as dense per-slab VPU ops (no cross-sublane XLU reduction).
    m = logits_ref[0].astype(jnp.float32)
    for ci in range(1, c):
        m = jnp.maximum(m, logits_ref[ci].astype(jnp.float32))

    # Numerically-stable log-sum-exp + true-class logit + per-pixel weight,
    # all as dense (TH, TW) slabs; class weights are compile-time constants.
    sumexp = jnp.zeros_like(m)
    true_z = jnp.zeros_like(m)
    wpix = jnp.zeros_like(m)
    for ci in range(c):
        z = logits_ref[ci].astype(jnp.float32) - m
        sumexp = sumexp + jnp.exp(z)
        is_c = labels == ci
        true_z = jnp.where(is_c, z, true_z)
        wpix = jnp.where(is_c, class_weights[ci], wpix)

    nll = jnp.log(sumexp) - true_z                 # -log_softmax[true class]

    # OHEM keep test reuses nll:  p_true <= thresh  <=>  nll >= -log(thresh).
    keep = jnp.logical_and(labels != ignore_label, nll >= nll_thresh)
    wk = jnp.where(keep, wpix, 0.0)

    num_ref[...] += wk * nll
    den_ref[...] += wk


def ohem_cross_entropy_2d(predict, target, *, ignore_label=255, thresh=0.6,
                          min_kept=0, tile_h=64, tile_w=512):
    """predict: (n, c, h, w) NCHW (as in PyTorch); target: (n, h, w) int."""
    # TODO(synk): min_kept > 0 needs a global top-k over true-class probs to
    # raise the threshold; only the default min_kept=0 path is implemented.
    assert min_kept == 0
    n, c, h, w = predict.shape
    assert target.shape == (n, h, w)
    assert c == len(CLASS_WEIGHTS)

    # Tile selection: lanes = width (multiple of 128), sublanes = height
    # (multiple of 8). ~64x512 pixels -> ~2.4 MiB of f32 logits per block.
    tw = min(int(tile_w), _round_up(w, 128))
    tw = max(128, (tw // 128) * 128)
    th = min(int(tile_h), _round_up(h, 8))
    th = max(8, (th // 8) * 8)

    h_pad = _round_up(h, th)
    w_pad = _round_up(w, tw)

    logits = predict
    labels = target.astype(jnp.int32)
    if (h_pad, w_pad) != (h, w):
        # Edge-only padding (no-op for aligned inputs); padded pixels get the
        # ignore label so they contribute nothing.
        logits = jnp.pad(logits, ((0, 0), (0, 0), (0, h_pad - h), (0, w_pad - w)))
        labels = jnp.pad(labels, ((0, 0), (0, h_pad - h), (0, w_pad - w)),
                         constant_values=ignore_label)

    kernel = functools.partial(
        _ohem_ce_kernel,
        ignore_label=int(ignore_label),
        nll_thresh=float(-math.log(float(thresh))),
        class_weights=tuple(float(v) for v in CLASS_WEIGHTS))

    num, den = pl.pallas_call(
        kernel,
        out_shape=(jax.ShapeDtypeStruct((n, th, tw), jnp.float32),
                   jax.ShapeDtypeStruct((n, th, tw), jnp.float32)),
        grid=(n, h_pad // th, w_pad // tw),            # reduction axes last
        in_specs=[
            pl.BlockSpec((None, c, th, tw), lambda b, i, j: (b, 0, i, j)),
            pl.BlockSpec((None, th, tw), lambda b, i, j: (b, i, j)),
        ],
        out_specs=[
            pl.BlockSpec((None, th, tw), lambda b, i, j: (b, 0, 0)),
            pl.BlockSpec((None, th, tw), lambda b, i, j: (b, 0, 0)),
        ],
        compiler_params=pltpu.CompilerParams(
            dimension_semantics=("parallel", "arbitrary", "arbitrary")),
    )(logits, labels)

    num_sum = jnp.sum(num)
    den_sum = jnp.sum(den)
    # Guard the empty-keep case (PyTorch would produce NaN here).
    den_safe = jnp.where(den_sum > 0, den_sum, 1.0)
    return jnp.where(den_sum > 0, num_sum / den_safe, 0.0)


def _reference_ohem(predict, target, ignore_label=255, thresh=0.6):
    """Pure-JAX reference mirroring the PyTorch forward (min_kept=0)."""
    n, c, h, w = predict.shape
    logits = jnp.transpose(predict, (0, 2, 3, 1)).reshape(-1, c).astype(jnp.float32)
    labels = target.reshape(-1).astype(jnp.int32)
    logp = jax.nn.log_softmax(logits, axis=-1)
    valid = labels != ignore_label
    safe = jnp.where(valid, labels, 0)
    idx = jnp.arange(labels.shape[0])
    p_true = jnp.exp(logp[idx, safe])
    keep = valid & (p_true <= thresh)
    cw = jnp.asarray(CLASS_WEIGHTS, dtype=jnp.float32)
    wts = cw[safe]
    nll = -logp[idx, safe]
    num = jnp.sum(jnp.where(keep, wts * nll, 0.0))
    den = jnp.sum(jnp.where(keep, wts, 0.0))
    return num / den


if __name__ == "__main__":
    key = jax.random.PRNGKey(0)
    k_pred, k_tgt, k_ign = jax.random.split(key, 3)

    n, c, h, w = 2, 19, 16, 16     # c = 19 matches the hard-coded class weights
    predict = jax.random.normal(k_pred, (n, c, h, w), dtype=jnp.float32)
    target = jax.random.randint(k_tgt, (n, h, w), 0, c, dtype=jnp.int32)
    # Sprinkle in some ignore_label pixels.
    ignore_mask = jax.random.bernoulli(k_ign, 0.1, (n, h, w))
    target = jnp.where(ignore_mask, 255, target)

    loss = ohem_cross_entropy_2d(predict, target)
    loss = jax.block_until_ready(loss)

    ref = _reference_ohem(predict, target)
    assert jnp.allclose(loss, ref, rtol=1e-4, atol=1e-5), (loss, ref)

    print("KERNEL_OK")
</pallas_src>

<mosaic_0001>
module attributes {stable_mosaic.version = 11 : i64} {
  func.func @_ohem_ce_kernel(%arg0: i32, %arg1: i32, %arg2: i32, %arg3: memref<1x19x16x128xf32, #tpu.memory_space<vmem>>, %arg4: memref<1x16x128xi32, #tpu.memory_space<vmem>>, %arg5: memref<1x16x128xf32, #tpu.memory_space<vmem>>, %arg6: memref<1x16x128xf32, #tpu.memory_space<vmem>>) attributes {dimension_semantics = [#tpu.dimension_semantics<parallel>, #tpu.dimension_semantics<arbitrary>, #tpu.dimension_semantics<arbitrary>], iteration_bounds = array<i64: 2, 1, 1>, scalar_prefetch = 0 : i64, scratch_operands = 0 : i64, tpu.core_type = #tpu.core_type<tc>, window_params = [{transform_indices = @transform_0, window_bounds = array<i64: 1, 19, 16, 128>}, {transform_indices = @transform_1, window_bounds = array<i64: 1, 16, 128>}, {transform_indices = @transform_2, window_bounds = array<i64: 1, 16, 128>}, {transform_indices = @transform_3, window_bounds = array<i64: 1, 16, 128>}]} {
    %c0_i32 = arith.constant 0 : i32
    %0 = arith.cmpi eq, %arg1, %c0_i32 : i32
    %c0_i32_0 = arith.constant 0 : i32
    %1 = arith.cmpi eq, %arg2, %c0_i32_0 : i32
    %2 = arith.andi %0, %1 : i1
    %3 = arith.extui %2 : i1 to i32
    %c0_i32_1 = arith.constant 0 : i32
    %4 = arith.cmpi ne, %3, %c0_i32_1 : i32
    scf.if %4 {
      %cst_174 = arith.constant 0.000000e+00 : f32
      %278 = vector.broadcast %cst_174 : f32 to vector<16x128xf32>
      %c0_175 = arith.constant 0 : index
      %c0_176 = arith.constant 0 : index
      %c0_177 = arith.constant 0 : index
      %279 = vector.load %arg5[%c0_175, %c0_176, %c0_177] : memref<1x16x128xf32, #tpu.memory_space<vmem>>, vector<1x16x128xf32>
      %280 = vector.shape_cast %279 : vector<1x16x128xf32> to vector<16x128xf32>
      %281 = vector.shape_cast %278 : vector<16x128xf32> to vector<1x16x128xf32>
      tpu.vector_store %arg5[%c0_175, %c0_176, %c0_177], %281 {strides = array<i32>} : memref<1x16x128xf32, #tpu.memory_space<vmem>>, vector<1x16x128xf32>,
      %cst_178 = arith.constant 0.000000e+00 : f32
      %282 = vector.broadcast %cst_178 : f32 to vector<16x128xf32>
      %c0_179 = arith.constant 0 : index
      %c0_180 = arith.constant 0 : index
      %c0_181 = arith.constant 0 : index
      %283 = vector.load %arg6[%c0_179, %c0_180, %c0_181] : memref<1x16x128xf32, #tpu.memory_space<vmem>>, vector<1x16x128xf32>
      %284 = vector.shape_cast %283 : vector<1x16x128xf32> to vector<16x128xf32>
      %285 = vector.shape_cast %282 : vector<16x128xf32> to vector<1x16x128xf32>
      tpu.vector_store %arg6[%c0_179, %c0_180, %c0_181], %285 {strides = array<i32>} : memref<1x16x128xf32, #tpu.memory_space<vmem>>, vector<1x16x128xf32>,
    } else {
    }
    %c0 = arith.constant 0 : index
    %c0_2 = arith.constant 0 : index
    %c0_3 = arith.constant 0 : index
    %5 = vector.load %arg4[%c0, %c0_2, %c0_3] : memref<1x16x128xi32, #tpu.memory_space<vmem>>, vector<1x16x128xi32>
    %6 = vector.shape_cast %5 : vector<1x16x128xi32> to vector<16x128xi32>
    %c0_4 = arith.constant 0 : index
    %c0_5 = arith.constant 0 : index
    %c0_6 = arith.constant 0 : index
    %c0_7 = arith.constant 0 : index
    %7 = vector.load %arg3[%c0_4, %c0_5, %c0_6, %c0_7] : memref<1x19x16x128xf32, #tpu.memory_space<vmem>>, vector<1x1x16x128xf32>
    %8 = vector.shape_cast %7 : vector<1x1x16x128xf32> to vector<16x128xf32>
    %c0_8 = arith.constant 0 : index
    %c1 = arith.constant 1 : index
    %c0_9 = arith.constant 0 : index
    %c0_10 = arith.constant 0 : index
    %9 = vector.load %arg3[%c0_8, %c1, %c0_9, %c0_10] : memref<1x19x16x128xf32, #tpu.memory_space<vmem>>, vector<1x1x16x128xf32>
    %10 = vector.shape_cast %9 : vector<1x1x16x128xf32> to vector<16x128xf32>
    %11 = arith.maximumf %8, %10 : vector<16x128xf32>
    %c0_11 = arith.constant 0 : index
    %c2 = arith.constant 2 : index
    %c0_12 = arith.constant 0 : index
    %c0_13 = arith.constant 0 : index
    %12 = vector.load %arg3[%c0_11, %c2, %c0_12, %c0_13] : memref<1x19x16x128xf32, #tpu.memory_space<vmem>>, vector<1x1x16x128xf32>
    %13 = vector.shape_cast %12 : vector<1x1x16x128xf32> to vector<16x128xf32>
    %14 = arith.maximumf %11, %13 : vector<16x128xf32>
    %c0_14 = arith.constant 0 : index
    %c3 = arith.constant 3 : index
    %c0_15 = arith.constant 0 : index
    %c0_16 = arith.constant 0 : index
    %15 = vector.load %arg3[%c0_14, %c3, %c0_15, %c0_16] : memref<1x19x16x128xf32, #tpu.memory_space<vmem>>, vector<1x1x16x128xf32>
    %16 = vector.shape_cast %15 : vector<1x1x16x128xf32> to vector<16x128xf32>
    %17 = arith.maximumf %14, %16 : vector<16x128xf32>
    %c0_17 = arith.constant 0 : index
    %c4 = arith.constant 4 : index
    %c0_18 = arith.constant 0 : index
    %c0_19 = arith.constant 0 : index
    %18 = vector.load %arg3[%c0_17, %c4, %c0_18, %c0_19] : memref<1x19x16x128xf32, #tpu.memory_space<vmem>>, vector<1x1x16x128xf32>
    %19 = vector.shape_cast %18 : vector<1x1x16x128xf32> to vector<16x128xf32>
    %20 = arith.maximumf %17, %19 : vector<16x128xf32>
    %c0_20 = arith.constant 0 : index
    %c5 = arith.constant 5 : index
    %c0_21 = arith.constant 0 : index
    %c0_22 = arith.constant 0 : index
    %21 = vector.load %arg3[%c0_20, %c5, %c0_21, %c0_22] : memref<1x19x16x128xf32, #tpu.memory_space<vmem>>, vector<1x1x16x128xf32>
    %22 = vector.shape_cast %21 : vector<1x1x16x128xf32> to vector<16x128xf32>
    %23 = arith.maximumf %20, %22 : vector<16x128xf32>
    %c0_23 = arith.constant 0 : index
    %c6 = arith.constant 6 : index
    %c0_24 = arith.constant 0 : index
    %c0_25 = arith.constant 0 : index
    %24 = vector.load %arg3[%c0_23, %c6, %c0_24, %c0_25] : memref<1x19x16x128xf32, #tpu.memory_space<vmem>>, vector<1x1x16x128xf32>
    %25 = vector.shape_cast %24 : vector<1x1x16x128xf32> to vector<16x128xf32>
    %26 = arith.maximumf %23, %25 : vector<16x128xf32>
    %c0_26 = arith.constant 0 : index
    %c7 = arith.constant 7 : index
    %c0_27 = arith.constant 0 : index
    %c0_28 = arith.constant 0 : index
    %27 = vector.load %arg3[%c0_26, %c7, %c0_27, %c0_28] : memref<1x19x16x128xf32, #tpu.memory_space<vmem>>, vector<1x1x16x128xf32>
    %28 = vector.shape_cast %27 : vector<1x1x16x128xf32> to vector<16x128xf32>
    %29 = arith.maximumf %26, %28 : vector<16x128xf32>
    %c0_29 = arith.constant 0 : index
    %c8 = arith.constant 8 : index
    %c0_30 = arith.constant 0 : index
    %c0_31 = arith.constant 0 : index
    %30 = vector.load %arg3[%c0_29, %c8, %c0_30, %c0_31] : memref<1x19x16x128xf32, #tpu.memory_space<vmem>>, vector<1x1x16x128xf32>
    %31 = vector.shape_cast %30 : vector<1x1x16x128xf32> to vector<16x128xf32>
    %32 = arith.maximumf %29, %31 : vector<16x128xf32>
    %c0_32 = arith.constant 0 : index
    %c9 = arith.constant 9 : index
    %c0_33 = arith.constant 0 : index
    %c0_34 = arith.constant 0 : index
    %33 = vector.load %arg3[%c0_32, %c9, %c0_33, %c0_34] : memref<1x19x16x128xf32, #tpu.memory_space<vmem>>, vector<1x1x16x128xf32>
    %34 = vector.shape_cast %33 : vector<1x1x16x128xf32> to vector<16x128xf32>
    %35 = arith.maximumf %32, %34 : vector<16x128xf32>
    %c0_35 = arith.constant 0 : index
    %c10 = arith.constant 10 : index
    %c0_36 = arith.constant 0 : index
    %c0_37 = arith.constant 0 : index
    %36 = vector.load %arg3[%c0_35, %c10, %c0_36, %c0_37] : memref<1x19x16x128xf32, #tpu.memory_space<vmem>>, vector<1x1x16x128xf32>
    %37 = vector.shape_cast %36 : vector<1x1x16x128xf32> to vector<16x128xf32>
    %38 = arith.maximumf %35, %37 : vector<16x128xf32>
    %c0_38 = arith.constant 0 : index
    %c11 = arith.constant 11 : index
    %c0_39 = arith.constant 0 : index
    %c0_40 = arith.constant 0 : index
    %39 = vector.load %arg3[%c0_38, %c11, %c0_39, %c0_40] : memref<1x19x16x128xf32, #tpu.memory_space<vmem>>, vector<1x1x16x128xf32>
    %40 = vector.shape_cast %39 : vector<1x1x16x128xf32> to vector<16x128xf32>
    %41 = arith.maximumf %38, %40 : vector<16x128xf32>
    %c0_41 = arith.constant 0 : index
    %c12 = arith.constant 12 : index
    %c0_42 = arith.constant 0 : index
    %c0_43 = arith.constant 0 : index
    %42 = vector.load %arg3[%c0_41, %c12, %c0_42, %c0_43] : memref<1x19x16x128xf32, #tpu.memory_space<vmem>>, vector<1x1x16x128xf32>
    %43 = vector.shape_cast %42 : vector<1x1x16x128xf32> to vector<16x128xf32>
    %44 = arith.maximumf %41, %43 : vector<16x128xf32>
    %c0_44 = arith.constant 0 : index
    %c13 = arith.constant 13 : index
    %c0_45 = arith.constant 0 : index
    %c0_46 = arith.constant 0 : index
    %45 = vector.load %arg3[%c0_44, %c13, %c0_45, %c0_46] : memref<1x19x16x128xf32, #tpu.memory_space<vmem>>, vector<1x1x16x128xf32>
    %46 = vector.shape_cast %45 : vector<1x1x16x128xf32> to vector<16x128xf32>
    %47 = arith.maximumf %44, %46 : vector<16x128xf32>
    %c0_47 = arith.constant 0 : index
    %c14 = arith.constant 14 : index
    %c0_48 = arith.constant 0 : index
    %c0_49 = arith.constant 0 : index
    %48 = vector.load %arg3[%c0_47, %c14, %c0_48, %c0_49] : memref<1x19x16x128xf32, #tpu.memory_space<vmem>>, vector<1x1x16x128xf32>
    %49 = vector.shape_cast %48 : vector<1x1x16x128xf32> to vector<16x128xf32>
    %50 = arith.maximumf %47, %49 : vector<16x128xf32>
    %c0_50 = arith.constant 0 : index
    %c15 = arith.constant 15 : index
    %c0_51 = arith.constant 0 : index
    %c0_52 = arith.constant 0 : index
    %51 = vector.load %arg3[%c0_50, %c15, %c0_51, %c0_52] : memref<1x19x16x128xf32, #tpu.memory_space<vmem>>, vector<1x1x16x128xf32>
    %52 = vector.shape_cast %51 : vector<1x1x16x128xf32> to vector<16x128xf32>
    %53 = arith.maximumf %50, %52 : vector<16x128xf32>
    %c0_53 = arith.constant 0 : index
    %c16 = arith.constant 16 : index
    %c0_54 = arith.constant 0 : index
    %c0_55 = arith.constant 0 : index
    %54 = vector.load %arg3[%c0_53, %c16, %c0_54, %c0_55] : memref<1x19x16x128xf32, #tpu.memory_space<vmem>>, vector<1x1x16x128xf32>
    %55 = vector.shape_cast %54 : vector<1x1x16x128xf32> to vector<16x128xf32>
    %56 = arith.maximumf %53, %55 : vector<16x128xf32>
    %c0_56 = arith.constant 0 : index
    %c17 = arith.constant 17 : index
    %c0_57 = arith.constant 0 : index
    %c0_58 = arith.constant 0 : index
    %57 = vector.load %arg3[%c0_56, %c17, %c0_57, %c0_58] : memref<1x19x16x128xf32, #tpu.memory_space<vmem>>, vector<1x1x16x128xf32>
    %58 = vector.shape_cast %57 : vector<1x1x16x128xf32> to vector<16x128xf32>
    %59 = arith.maximumf %56, %58 : vector<16x128xf32>
    %c0_59 = arith.constant 0 : index
    %c18 = arith.constant 18 : index
    %c0_60 = arith.constant 0 : index
    %c0_61 = arith.constant 0 : index
    %60 = vector.load %arg3[%c0_59, %c18, %c0_60, %c0_61] : memref<1x19x16x128xf32, #tpu.memory_space<vmem>>, vector<1x1x16x128xf32>
    %61 = vector.shape_cast %60 : vector<1x1x16x128xf32> to vector<16x128xf32>
    %62 = arith.maximumf %59, %61 : vector<16x128xf32>
    %cst = arith.constant 0.000000e+00 : f32
    %63 = vector.broadcast %cst : f32 to vector<16x128xf32>
    %cst_62 = arith.constant 0.000000e+00 : f32
    %64 = vector.broadcast %cst_62 : f32 to vector<16x128xf32>
    %cst_63 = arith.constant 0.000000e+00 : f32
    %65 = vector.broadcast %cst_63 : f32 to vector<16x128xf32>
    %c0_64 = arith.constant 0 : index
    %c0_65 = arith.constant 0 : index
    %c0_66 = arith.constant 0 : index
    %c0_67 = arith.constant 0 : index
    %66 = vector.load %arg3[%c0_64, %c0_65, %c0_66, %c0_67] : memref<1x19x16x128xf32, #tpu.memory_space<vmem>>, vector<1x1x16x128xf32>
    %67 = vector.shape_cast %66 : vector<1x1x16x128xf32> to vector<16x128xf32>
    %68 = arith.subf %67, %62 : vector<16x128xf32>
    %69 = math.exp %68 : vector<16x128xf32>
    %70 = arith.addf %63, %69 : vector<16x128xf32>
    %c0_i32_68 = arith.constant 0 : i32
    %71 = vector.broadcast %c0_i32_68 : i32 to vector<16x128xi32>
    %72 = arith.cmpi eq, %6, %71 : vector<16x128xi32>
    %73 = arith.select %72, %68, %64 : vector<16x128xi1>, vector<16x128xf32>
    %cst_69 = arith.constant 8.373000e-01 : f32
    %74 = vector.broadcast %cst_69 : f32 to vector<16x128xf32>
    %75 = arith.select %72, %74, %65 : vector<16x128xi1>, vector<16x128xf32>
    %c0_70 = arith.constant 0 : index
    %c1_71 = arith.constant 1 : index
    %c0_72 = arith.constant 0 : index
    %c0_73 = arith.constant 0 : index
    %76 = vector.load %arg3[%c0_70, %c1_71, %c0_72, %c0_73] : memref<1x19x16x128xf32, #tpu.memory_space<vmem>>, vector<1x1x16x128xf32>
    %77 = vector.shape_cast %76 : vector<1x1x16x128xf32> to vector<16x128xf32>
    %78 = arith.subf %77, %62 : vector<16x128xf32>
    %79 = math.exp %78 : vector<16x128xf32>
    %80 = arith.addf %70, %79 : vector<16x128xf32>
    %c1_i32 = arith.constant 1 : i32
    %81 = vector.broadcast %c1_i32 : i32 to vector<16x128xi32>
    %82 = arith.cmpi eq, %6, %81 : vector<16x128xi32>
    %83 = arith.select %82, %78, %73 : vector<16x128xi1>, vector<16x128xf32>
    %cst_74 = arith.constant 9.180000e-01 : f32
    %84 = vector.broadcast %cst_74 : f32 to vector<16x128xf32>
    %85 = arith.select %82, %84, %75 : vector<16x128xi1>, vector<16x128xf32>
    %c0_75 = arith.constant 0 : index
    %c2_76 = arith.constant 2 : index
    %c0_77 = arith.constant 0 : index
    %c0_78 = arith.constant 0 : index
    %86 = vector.load %arg3[%c0_75, %c2_76, %c0_77, %c0_78] : memref<1x19x16x128xf32, #tpu.memory_space<vmem>>, vector<1x1x16x128xf32>
    %87 = vector.shape_cast %86 : vector<1x1x16x128xf32> to vector<16x128xf32>
    %88 = arith.subf %87, %62 : vector<16x128xf32>
    %89 = math.exp %88 : vector<16x128xf32>
    %90 = arith.addf %80, %89 : vector<16x128xf32>
    %c2_i32 = arith.constant 2 : i32
    %91 = vector.broadcast %c2_i32 : i32 to vector<16x128xi32>
    %92 = arith.cmpi eq, %6, %91 : vector<16x128xi32>
    %93 = arith.select %92, %88, %83 : vector<16x128xi1>, vector<16x128xf32>
    %cst_79 = arith.constant 0.865999996 : f32
    %94 = vector.broadcast %cst_79 : f32 to vector<16x128xf32>
    %95 = arith.select %92, %94, %85 : vector<16x128xi1>, vector<16x128xf32>
    %c0_80 = arith.constant 0 : index
    %c3_81 = arith.constant 3 : index
    %c0_82 = arith.constant 0 : index
    %c0_83 = arith.constant 0 : index
    %96 = vector.load %arg3[%c0_80, %c3_81, %c0_82, %c0_83] : memref<1x19x16x128xf32, #tpu.memory_space<vmem>>, vector<1x1x16x128xf32>
    %97 = vector.shape_cast %96 : vector<1x1x16x128xf32> to vector<16x128xf32>
    %98 = arith.subf %97, %62 : vector<16x128xf32>
    %99 = math.exp %98 : vector<16x128xf32>
    %100 = arith.addf %90, %99 : vector<16x128xf32>
    %c3_i32 = arith.constant 3 : i32
    %101 = vector.broadcast %c3_i32 : i32 to vector<16x128xi32>
    %102 = arith.cmpi eq, %6, %101 : vector<16x128xi32>
    %103 = arith.select %102, %98, %93 : vector<16x128xi1>, vector<16x128xf32>
    %cst_84 = arith.constant 1.034500e+00 : f32
    %104 = vector.broadcast %cst_84 : f32 to vector<16x128xf32>
    %105 = arith.select %102, %104, %95 : vector<16x128xi1>, vector<16x128xf32>
    %c0_85 = arith.constant 0 : index
    %c4_86 = arith.constant 4 : index
    %c0_87 = arith.constant 0 : index
    %c0_88 = arith.constant 0 : index
    %106 = vector.load %arg3[%c0_85, %c4_86, %c0_87, %c0_88] : memref<1x19x16x128xf32, #tpu.memory_space<vmem>>, vector<1x1x16x128xf32>
    %107 = vector.shape_cast %106 : vector<1x1x16x128xf32> to vector<16x128xf32>
    %108 = arith.subf %107, %62 : vector<16x128xf32>
    %109 = math.exp %108 : vector<16x128xf32>
    %110 = arith.addf %100, %109 : vector<16x128xf32>
    %c4_i32 = arith.constant 4 : i32
    %111 = vector.broadcast %c4_i32 : i32 to vector<16x128xi32>
    %112 = arith.cmpi eq, %6, %111 : vector<16x128xi32>
    %113 = arith.select %112, %108, %103 : vector<16x128xi1>, vector<16x128xf32>
    %cst_89 = arith.constant 1.016600e+00 : f32
    %114 = vector.broadcast %cst_89 : f32 to vector<16x128xf32>
    %115 = arith.select %112, %114, %105 : vector<16x128xi1>, vector<16x128xf32>
    %c0_90 = arith.constant 0 : index
    %c5_91 = arith.constant 5 : index
    %c0_92 = arith.constant 0 : index
    %c0_93 = arith.constant 0 : index
    %116 = vector.load %arg3[%c0_90, %c5_91, %c0_92, %c0_93] : memref<1x19x16x128xf32, #tpu.memory_space<vmem>>, vector<1x1x16x128xf32>
    %117 = vector.shape_cast %116 : vector<1x1x16x128xf32> to vector<16x128xf32>
    %118 = arith.subf %117, %62 : vector<16x128xf32>
    %119 = math.exp %118 : vector<16x128xf32>
    %120 = arith.addf %110, %119 : vector<16x128xf32>
    %c5_i32 = arith.constant 5 : i32
    %121 = vector.broadcast %c5_i32 : i32 to vector<16x128xi32>
    %122 = arith.cmpi eq, %6, %121 : vector<16x128xi32>
    %123 = arith.select %122, %118, %113 : vector<16x128xi1>, vector<16x128xf32>
    %cst_94 = arith.constant 9.969000e-01 : f32
    %124 = vector.broadcast %cst_94 : f32 to vector<16x128xf32>
    %125 = arith.select %122, %124, %115 : vector<16x128xi1>, vector<16x128xf32>
    %c0_95 = arith.constant 0 : index
    %c6_96 = arith.constant 6 : index
    %c0_97 = arith.constant 0 : index
    %c0_98 = arith.constant 0 : index
    %126 = vector.load %arg3[%c0_95, %c6_96, %c0_97, %c0_98] : memref<1x19x16x128xf32, #tpu.memory_space<vmem>>, vector<1x1x16x128xf32>
    %127 = vector.shape_cast %126 : vector<1x1x16x128xf32> to vector<16x128xf32>
    %128 = arith.subf %127, %62 : vector<16x128xf32>
    %129 = math.exp %128 : vector<16x128xf32>
    %130 = arith.addf %120, %129 : vector<16x128xf32>
    %c6_i32 = arith.constant 6 : i32
    %131 = vector.broadcast %c6_i32 : i32 to vector<16x128xi32>
    %132 = arith.cmpi eq, %6, %131 : vector<16x128xi32>
    %133 = arith.select %132, %128, %123 : vector<16x128xi1>, vector<16x128xf32>
    %cst_99 = arith.constant 0.975399971 : f32
    %134 = vector.broadcast %cst_99 : f32 to vector<16x128xf32>
    %135 = arith.select %132, %134, %125 : vector<16x128xi1>, vector<16x128xf32>
    %c0_100 = arith.constant 0 : index
    %c7_101 = arith.constant 7 : index
    %c0_102 = arith.constant 0 : index
    %c0_103 = arith.constant 0 : index
    %136 = vector.load %arg3[%c0_100, %c7_101, %c0_102, %c0_103] : memref<1x19x16x128xf32, #tpu.memory_space<vmem>>, vector<1x1x16x128xf32>
    %137 = vector.shape_cast %136 : vector<1x1x16x128xf32> to vector<16x128xf32>
    %138 = arith.subf %137, %62 : vector<16x128xf32>
    %139 = math.exp %138 : vector<16x128xf32>
    %140 = arith.addf %130, %139 : vector<16x128xf32>
    %c7_i32 = arith.constant 7 : i32
    %141 = vector.broadcast %c7_i32 : i32 to vector<16x128xi32>
    %142 = arith.cmpi eq, %6, %141 : vector<16x128xi32>
    %143 = arith.select %142, %138, %133 : vector<16x128xi1>, vector<16x128xf32>
    %cst_104 = arith.constant 1.048900e+00 : f32
    %144 = vector.broadcast %cst_104 : f32 to vector<16x128xf32>
    %145 = arith.select %142, %144, %135 : vector<16x128xi1>, vector<16x128xf32>
    %c0_105 = arith.constant 0 : index
    %c8_106 = arith.constant 8 : index
    %c0_107 = arith.constant 0 : index
    %c0_108 = arith.constant 0 : index
    %146 = vector.load %arg3[%c0_105, %c8_106, %c0_107, %c0_108] : memref<1x19x16x128xf32, #tpu.memory_space<vmem>>, vector<1x1x16x128xf32>
    %147 = vector.shape_cast %146 : vector<1x1x16x128xf32> to vector<16x128xf32>
    %148 = arith.subf %147, %62 : vector<16x128xf32>
    %149 = math.exp %148 : vector<16x128xf32>
    %150 = arith.addf %140, %149 : vector<16x128xf32>
    %c8_i32 = arith.constant 8 : i32
    %151 = vector.broadcast %c8_i32 : i32 to vector<16x128xi32>
    %152 = arith.cmpi eq, %6, %151 : vector<16x128xi32>
    %153 = arith.select %152, %148, %143 : vector<16x128xi1>, vector<16x128xf32>
    %cst_109 = arith.constant 8.786000e-01 : f32
    %154 = vector.broadcast %cst_109 : f32 to vector<16x128xf32>
    %155 = arith.select %152, %154, %145 : vector<16x128xi1>, vector<16x128xf32>
    %c0_110 = arith.constant 0 : index
    %c9_111 = arith.constant 9 : index
    %c0_112 = arith.constant 0 : index
    %c0_113 = arith.constant 0 : index
    %156 = vector.load %arg3[%c0_110, %c9_111, %c0_112, %c0_113] : memref<1x19x16x128xf32, #tpu.memory_space<vmem>>, vector<1x1x16x128xf32>
    %157 = vector.shape_cast %156 : vector<1x1x16x128xf32> to vector<16x128xf32>
    %158 = arith.subf %157, %62 : vector<16x128xf32>
    %159 = math.exp %158 : vector<16x128xf32>
    %160 = arith.addf %150, %159 : vector<16x128xf32>
    %c9_i32 = arith.constant 9 : i32
    %161 = vector.broadcast %c9_i32 : i32 to vector<16x128xi32>
    %162 = arith.cmpi eq, %6, %161 : vector<16x128xi32>
    %163 = arith.select %162, %158, %153 : vector<16x128xi1>, vector<16x128xf32>
    %cst_114 = arith.constant 1.002300e+00 : f32
    %164 = vector.broadcast %cst_114 : f32 to vector<16x128xf32>
    %165 = arith.select %162, %164, %155 : vector<16x128xi1>, vector<16x128xf32>
    %c0_115 = arith.constant 0 : index
    %c10_116 = arith.constant 10 : index
    %c0_117 = arith.constant 0 : index
    %c0_118 = arith.constant 0 : index
    %166 = vector.load %arg3[%c0_115, %c10_116, %c0_117, %c0_118] : memref<1x19x16x128xf32, #tpu.memory_space<vmem>>, vector<1x1x16x128xf32>
    %167 = vector.shape_cast %166 : vector<1x1x16x128xf32> to vector<16x128xf32>
    %168 = arith.subf %167, %62 : vector<16x128xf32>
    %169 = math.exp %168 : vector<16x128xf32>
    %170 = arith.addf %160, %169 : vector<16x128xf32>
    %c10_i32 = arith.constant 10 : i32
    %171 = vector.broadcast %c10_i32 : i32 to vector<16x128xi32>
    %172 = arith.cmpi eq, %6, %171 : vector<16x128xi32>
    %173 = arith.select %172, %168, %163 : vector<16x128xi1>, vector<16x128xf32>
    %cst_119 = arith.constant 0.953899979 : f32
    %174 = vector.broadcast %cst_119 : f32 to vector<16x128xf32>
    %175 = arith.select %172, %174, %165 : vector<16x128xi1>, vector<16x128xf32>
    %c0_120 = arith.constant 0 : index
    %c11_121 = arith.constant 11 : index
    %c0_122 = arith.constant 0 : index
    %c0_123 = arith.constant 0 : index
    %176 = vector.load %arg3[%c0_120, %c11_121, %c0_122, %c0_123] : memref<1x19x16x128xf32, #tpu.memory_space<vmem>>, vector<1x1x16x128xf32>
    %177 = vector.shape_cast %176 : vector<1x1x16x128xf32> to vector<16x128xf32>
    %178 = arith.subf %177, %62 : vector<16x128xf32>
    %179 = math.exp %178 : vector<16x128xf32>
    %180 = arith.addf %170, %179 : vector<16x128xf32>
    %c11_i32 = arith.constant 11 : i32
    %181 = vector.broadcast %c11_i32 : i32 to vector<16x128xi32>
    %182 = arith.cmpi eq, %6, %181 : vector<16x128xi32>
    %183 = arith.select %182, %178, %173 : vector<16x128xi1>, vector<16x128xf32>
    %cst_124 = arith.constant 9.843000e-01 : f32
    %184 = vector.broadcast %cst_124 : f32 to vector<16x128xf32>
    %185 = arith.select %182, %184, %175 : vector<16x128xi1>, vector<16x128xf32>
    %c0_125 = arith.constant 0 : index
    %c12_126 = arith.constant 12 : index
    %c0_127 = arith.constant 0 : index
    %c0_128 = arith.constant 0 : index
    %186 = vector.load %arg3[%c0_125, %c12_126, %c0_127, %c0_128] : memref<1x19x16x128xf32, #tpu.memory_space<vmem>>, vector<1x1x16x128xf32>
    %187 = vector.shape_cast %186 : vector<1x1x16x128xf32> to vector<16x128xf32>
    %188 = arith.subf %187, %62 : vector<16x128xf32>
    %189 = math.exp %188 : vector<16x128xf32>
    %190 = arith.addf %180, %189 : vector<16x128xf32>
    %c12_i32 = arith.constant 12 : i32
    %191 = vector.broadcast %c12_i32 : i32 to vector<16x128xi32>
    %192 = arith.cmpi eq, %6, %191 : vector<16x128xi32>
    %193 = arith.select %192, %188, %183 : vector<16x128xi1>, vector<16x128xf32>
    %cst_129 = arith.constant 1.111600e+00 : f32
    %194 = vector.broadcast %cst_129 : f32 to vector<16x128xf32>
    %195 = arith.select %192, %194, %185 : vector<16x128xi1>, vector<16x128xf32>
    %c0_130 = arith.constant 0 : index
    %c13_131 = arith.constant 13 : index
    %c0_132 = arith.constant 0 : index
    %c0_133 = arith.constant 0 : index
    %196 = vector.load %arg3[%c0_130, %c13_131, %c0_132, %c0_133] : memref<1x19x16x128xf32, #tpu.memory_space<vmem>>, vector<1x1x16x128xf32>
    %197 = vector.shape_cast %196 : vector<1x1x16x128xf32> to vector<16x128xf32>
    %198 = arith.subf %197, %62 : vector<16x128xf32>
    %199 = math.exp %198 : vector<16x128xf32>
    %200 = arith.addf %190, %199 : vector<16x128xf32>
    %c13_i32 = arith.constant 13 : i32
    %201 = vector.broadcast %c13_i32 : i32 to vector<16x128xi32>
    %202 = arith.cmpi eq, %6, %201 : vector<16x128xi32>
    %203 = arith.select %202, %198, %193 : vector<16x128xi1>, vector<16x128xf32>
    %cst_134 = arith.constant 0.903699994 : f32
    %204 = vector.broadcast %cst_134 : f32 to vector<16x128xf32>
    %205 = arith.select %202, %204, %195 : vector<16x128xi1>, vector<16x128xf32>
    %c0_135 = arith.constant 0 : index
    %c14_136 = arith.constant 14 : index
    %c0_137 = arith.constant 0 : index
    %c0_138 = arith.constant 0 : index
    %206 = vector.load %arg3[%c0_135, %c14_136, %c0_137, %c0_138] : memref<1x19x16x128xf32, #tpu.memory_space<vmem>>, vector<1x1x16x128xf32>
    %207 = vector.shape_cast %206 : vector<1x1x16x128xf32> to vector<16x128xf32>
    %208 = arith.subf %207, %62 : vector<16x128xf32>
    %209 = math.exp %208 : vector<16x128xf32>
    %210 = arith.addf %200, %209 : vector<16x128xf32>
    %c14_i32 = arith.constant 14 : i32
    %211 = vector.broadcast %c14_i32 : i32 to vector<16x128xi32>
    %212 = arith.cmpi eq, %6, %211 : vector<16x128xi32>
    %213 = arith.select %212, %208, %203 : vector<16x128xi1>, vector<16x128xf32>
    %cst_139 = arith.constant 1.086500e+00 : f32
    %214 = vector.broadcast %cst_139 : f32 to vector<16x128xf32>
    %215 = arith.select %212, %214, %205 : vector<16x128xi1>, vector<16x128xf32>
    %c0_140 = arith.constant 0 : index
    %c15_141 = arith.constant 15 : index
    %c0_142 = arith.constant 0 : index
    %c0_143 = arith.constant 0 : index
    %216 = vector.load %arg3[%c0_140, %c15_141, %c0_142, %c0_143] : memref<1x19x16x128xf32, #tpu.memory_space<vmem>>, vector<1x1x16x128xf32>
    %217 = vector.shape_cast %216 : vector<1x1x16x128xf32> to vector<16x128xf32>
    %218 = arith.subf %217, %62 : vector<16x128xf32>
    %219 = math.exp %218 : vector<16x128xf32>
    %220 = arith.addf %210, %219 : vector<16x128xf32>
    %c15_i32 = arith.constant 15 : i32
    %221 = vector.broadcast %c15_i32 : i32 to vector<16x128xi32>
    %222 = arith.cmpi eq, %6, %221 : vector<16x128xi32>
    %223 = arith.select %222, %218, %213 : vector<16x128xi1>, vector<16x128xf32>
    %cst_144 = arith.constant 1.095500e+00 : f32
    %224 = vector.broadcast %cst_144 : f32 to vector<16x128xf32>
    %225 = arith.select %222, %224, %215 : vector<16x128xi1>, vector<16x128xf32>
    %c0_145 = arith.constant 0 : index
    %c16_146 = arith.constant 16 : index
    %c0_147 = arith.constant 0 : index
    %c0_148 = arith.constant 0 : index
    %226 = vector.load %arg3[%c0_145, %c16_146, %c0_147, %c0_148] : memref<1x19x16x128xf32, #tpu.memory_space<vmem>>, vector<1x1x16x128xf32>
    %227 = vector.shape_cast %226 : vector<1x1x16x128xf32> to vector<16x128xf32>
    %228 = arith.subf %227, %62 : vector<16x128xf32>
    %229 = math.exp %228 : vector<16x128xf32>
    %230 = arith.addf %220, %229 : vector<16x128xf32>
    %c16_i32 = arith.constant 16 : i32
    %231 = vector.broadcast %c16_i32 : i32 to vector<16x128xi32>
    %232 = arith.cmpi eq, %6, %231 : vector<16x128xi32>
    %233 = arith.select %232, %228, %223 : vector<16x128xi1>, vector<16x128xf32>
    %cst_149 = arith.constant 1.086500e+00 : f32
    %234 = vector.broadcast %cst_149 : f32 to vector<16x128xf32>
    %235 = arith.select %232, %234, %225 : vector<16x128xi1>, vector<16x128xf32>
    %c0_150 = arith.constant 0 : index
    %c17_151 = arith.constant 17 : index
    %c0_152 = arith.constant 0 : index
    %c0_153 = arith.constant 0 : index
    %236 = vector.load %arg3[%c0_150, %c17_151, %c0_152, %c0_153] : memref<1x19x16x128xf32, #tpu.memory_space<vmem>>, vector<1x1x16x128xf32>
    %237 = vector.shape_cast %236 : vector<1x1x16x128xf32> to vector<16x128xf32>
    %238 = arith.subf %237, %62 : vector<16x128xf32>
    %239 = math.exp %238 : vector<16x128xf32>
    %240 = arith.addf %230, %239 : vector<16x128xf32>
    %c17_i32 = arith.constant 17 : i32
    %241 = vector.broadcast %c17_i32 : i32 to vector<16x128xi32>
    %242 = arith.cmpi eq, %6, %241 : vector<16x128xi32>
    %243 = arith.select %242, %238, %233 : vector<16x128xi1>, vector<16x128xf32>
    %cst_154 = arith.constant 1.152900e+00 : f32
    %244 = vector.broadcast %cst_154 : f32 to vector<16x128xf32>
    %245 = arith.select %242, %244, %235 : vector<16x128xi1>, vector<16x128xf32>
    %c0_155 = arith.constant 0 : index
    %c18_156 = arith.constant 18 : index
    %c0_157 = arith.constant 0 : index
    %c0_158 = arith.constant 0 : index
    %246 = vector.load %arg3[%c0_155, %c18_156, %c0_157, %c0_158] : memref<1x19x16x128xf32, #tpu.memory_space<vmem>>, vector<1x1x16x128xf32>
    %247 = vector.shape_cast %246 : vector<1x1x16x128xf32> to vector<16x128xf32>
    %248 = arith.subf %247, %62 : vector<16x128xf32>
    %249 = math.exp %248 : vector<16x128xf32>
    %250 = arith.addf %240, %249 : vector<16x128xf32>
    %c18_i32 = arith.constant 18 : i32
    %251 = vector.broadcast %c18_i32 : i32 to vector<16x128xi32>
    %252 = arith.cmpi eq, %6, %251 : vector<16x128xi32>
    %253 = arith.select %252, %248, %243 : vector<16x128xi1>, vector<16x128xf32>
    %cst_159 = arith.constant 1.050700e+00 : f32
    %254 = vector.broadcast %cst_159 : f32 to vector<16x128xf32>
    %255 = arith.select %252, %254, %245 : vector<16x128xi1>, vector<16x128xf32>
    %256 = math.log %250 : vector<16x128xf32>
    %257 = arith.subf %256, %253 : vector<16x128xf32>
    %c255_i32 = arith.constant 255 : i32
    %258 = vector.broadcast %c255_i32 : i32 to vector<16x128xi32>
    %259 = arith.cmpi ne, %6, %258 : vector<16x128xi32>
    %cst_160 = arith.constant 0.510825634 : f32
    %260 = vector.broadcast %cst_160 : f32 to vector<16x128xf32>
    %261 = arith.cmpf oge, %257, %260 : vector<16x128xf32>
    %262 = arith.andi %259, %261 : vector<16x128xi1>
    %cst_161 = arith.constant 0.000000e+00 : f32
    %263 = vector.broadcast %cst_161 : f32 to vector<16x128xf32>
    %264 = arith.select %262, %255, %263 : vector<16x128xi1>, vector<16x128xf32>
    %c0_162 = arith.constant 0 : index
    %c0_163 = arith.constant 0 : index
    %c0_164 = arith.constant 0 : index
    %265 = vector.load %arg5[%c0_162, %c0_163, %c0_164] : memref<1x16x128xf32, #tpu.memory_space<vmem>>, vector<1x16x128xf32>
    %266 = vector.shape_cast %265 : vector<1x16x128xf32> to vector<16x128xf32>
    %267 = arith.mulf %264, %257 : vector<16x128xf32>
    %268 = arith.addf %266, %267 : vector<16x128xf32>
    %c0_165 = arith.constant 0 : index
    %c0_166 = arith.constant 0 : index
    %c0_167 = arith.constant 0 : index
    %269 = vector.load %arg5[%c0_165, %c0_166, %c0_167] : memref<1x16x128xf32, #tpu.memory_space<vmem>>, vector<1x16x128xf32>
    %270 = vector.shape_cast %269 : vector<1x16x128xf32> to vector<16x128xf32>
    %271 = vector.shape_cast %268 : vector<16x128xf32> to vector<1x16x128xf32>
    tpu.vector_store %arg5[%c0_165, %c0_166, %c0_167], %271 {strides = array<i32>} : memref<1x16x128xf32, #tpu.memory_space<vmem>>, vector<1x16x128xf32>,
    %c0_168 = arith.constant 0 : index
    %c0_169 = arith.constant 0 : index
    %c0_170 = arith.constant 0 : index
    %272 = vector.load %arg6[%c0_168, %c0_169, %c0_170] : memref<1x16x128xf32, #tpu.memory_space<vmem>>, vector<1x16x128xf32>
    %273 = vector.shape_cast %272 : vector<1x16x128xf32> to vector<16x128xf32>
    %274 = arith.addf %273, %264 : vector<16x128xf32>
    %c0_171 = arith.constant 0 : index
    %c0_172 = arith.constant 0 : index
    %c0_173 = arith.constant 0 : index
    %275 = vector.load %arg6[%c0_171, %c0_172, %c0_173] : memref<1x16x128xf32, #tpu.memory_space<vmem>>, vector<1x16x128xf32>
    %276 = vector.shape_cast %275 : vector<1x16x128xf32> to vector<16x128xf32>
    %277 = vector.shape_cast %274 : vector<16x128xf32> to vector<1x16x128xf32>
    tpu.vector_store %arg6[%c0_171, %c0_172, %c0_173], %277 {strides = array<i32>} : memref<1x16x128xf32, #tpu.memory_space<vmem>>, vector<1x16x128xf32>,
    return
  }
  func.func @transform_0(%arg0: i32, %arg1: i32, %arg2: i32) -> (i32, i32, i32, i32) {
    %c0_i32 = arith.constant 0 : i32
    %c0_i32_0 = arith.constant 0 : i32
    return %arg0, %c0_i32, %arg1, %arg2 : i32, i32, i32, i32
  }
  func.func @transform_1(%arg0: i32, %arg1: i32, %arg2: i32) -> (i32, i32, i32) {
    %c0_i32 = arith.constant 0 : i32
    return %arg0, %arg1, %arg2 : i32, i32, i32
  }
  func.func @transform_2(%arg0: i32, %arg1: i32, %arg2: i32) -> (i32, i32, i32) {
    %c0_i32 = arith.constant 0 : i32
    %c0_i32_0 = arith.constant 0 : i32
    %c0_i32_1 = arith.constant 0 : i32
    return %arg0, %c0_i32, %c0_i32_0 : i32, i32, i32
  }
  func.func @transform_3(%arg0: i32, %arg1: i32, %arg2: i32) -> (i32, i32, i32) {
    %c0_i32 = arith.constant 0 : i32
    %c0_i32_0 = arith.constant 0 : i32
    %c0_i32_1 = arith.constant 0 : i32
    return %arg0, %c0_i32, %c0_i32_0 : i32, i32, i32
  }
}

</mosaic_0001>

<bundles_post_ra>
// kernel: tpu_custom_call.1
= control target key start
LH: loop header
LB: loop body
LE: loop exit
PB: predicated region body
PF: predicated region fallthrough
CT: control target
= control target key end

     0   :  { %9 = vsyncpa [#allocation3], 0  ;;  %s2094_s0 = inlined_call_operand.hbm [shape: f32[2,19,16,128], index: 0, kind: input, shape index: {}]   ;;  %s2095_s1 = inlined_call_operand.hbm [shape: s32[2,16,128], index: 1, kind: input, shape index: {}]   ;;  %s2096_s2 = inlined_call_operand.hbm [shape: f32[2,16,128], index: 2, kind: output, shape index: {0}]   ;;  %s2097_s3 = inlined_call_operand.hbm [shape: f32[2,16,128], index: 3, kind: output, shape index: {1}]  }
   0x1   :  { %11 = vsyncpa [#allocation3 + $0x1], 0 }
   0x2   :  { %12 = vsyncpa [#allocation6], 0 }
   0x3   :  { %14 = vsyncpa [#allocation6 + $0x1], 0 }
   0x4   :  { %15 = vsyncpa [#allocation4], 0 }
   0x5   :  { %17 = vsyncpa [#allocation4 + $0x1], 0 }
   0x6   :  { %18 = vsyncpa [#allocation9], 0 }
   0x7   :  { %20 = vsyncpa [#allocation9 + $0x1], 0  ;;  %s1283_s12 = smov 0   ;;  %s1285_s13 = smov 0  }
   0x8   :  { %s1287_s14 = smov 0   ;;  %s1289_s15 = smov 0  }
   0x9   :  { %s1291_s16 = smov 0   ;;  %s1293_s17 = smov 0  }
   0xa LB: > { %s855_s18 = sadd.s32 4294967295, %s1252_s17   ;;  %s856_s19 = sadd.s32 4294967294, %s1252_s17   ;;  %s1252_s17 = sphi %s1293_s17, %s26_s17   ;;  %s1248_s16 = sphi %s1291_s16, %s2115_s16   ;;  %s1244_s15 = sphi %s1289_s15, %s2114_s15   ;;  %s1240_s14 = sphi %s1287_s14, %s2113_s14   ;;  %s1236_s13 = sphi %s1285_s13, %s2112_s13   ;;  %s1232_s12 = sphi %s1283_s12, %s2111_s12  }
   0xb   : > { %s45_s20 = sadd.s32 1, %s1248_s16  ;;  %s56_s21 = sadd.s32 1, %s1240_s14 }
   0xc   : > { %p47_p0 = scmp.ge.s32.totalorder %s45_s20, 2  ;;  %p63_p1 = scmp.ne.s32.totalorder %s1240_s14, %s1236_s13 }
   0xd   : > { %p64_p2 = scmp.eq.s32.totalorder %s1252_s17, 0  ;;  %p69_p3 = scmp.ne.s32.totalorder %s1236_s13, %s1232_s12 }
   0xe   : > { %s2117_s20 = smov (%p47_p0, %s45_s20), 0  ;;  %p70_p5 = scmp.eq.s32.totalorder %s855_s18, 0 }
   0xf   : > { %p1324_p4 = por %p64_p2, %p63_p1  ;;  %s49_s23 = ssub.s32 %s1248_s16, %s2117_s20 }
  0x10   : > { %p123_p6 = scmp.eq.s32.totalorder %s855_s18, 1  ;;  %p54_p7 = scmp.eq.s32.totalorder %s49_s23, 0 }
  0x11   : > { %p1330_p8 = por %p70_p5, %p69_p3  ;;  %p129_p10 = scmp.eq.s32.totalorder %s856_s19, 1 }
  0x12   : > { %p1334_p9 = por %p123_p6, %p63_p1  ;;  %p939_p13 = scmp.lt.s32.totalorder %s1252_s17, 2 }
  0x13   : > { %s2101_s24 = scalar_select %p1330_p8, 1, 0 }
  0x14   : > { %s2102_s25 = scalar_select %p1334_p9, 1, 0 }
  0x15   : > { %s1339_s26 = scalar_select %p54_p7, %s1240_s14, %s56_s21  }
  0x16   : > { %p1341_p11 = por %p129_p10, %p69_p3  ;;  %s1348_s28 = sand.u32 1, %s1240_s14  }
  0x17   : > { %s914_s29 = smul.u32 304, %s1348_s28  ;;  %p1354_p0 = pnand %p939_p13, %p1324_p4 }
  0x18   : > { %s2103_s27 = scalar_select %p1341_p11, 1, 0 }
  0x19   : > { %s915_s30 = smul.u32 4864, %s1248_s16  ;;  %s179_s8 = scalar_lea.vmem [#allocation2], %s914_s29 }
  0x1a   : > { %s189_s9 = sshll.u32 %s179_s8, 4  ;;  %s176_s10 = scalar_lea.sflag [#allocation3], %s1348_s28  ;;  %s1363_s9 = int_to_ptr.vmem [resolvable:$true] %s189_s9 }
  0x1b   : > { %s1361_s7 = scalar_lea.hbm %s2094_s0, %s915_s30  ;;  %p1076_p3 = pneg %p1354_p0 }
  0x1c   : > { %s1074_s11 = scalar_lea.hbm %s1361_s7, 4864  ;;  %s1079_s21 = scalar_lea.hbm %s2094_s0, 9728 }
  0x1d   : > { %p1075_p2 = scmp.ne.s32.totalorder %s1361_s7, %s1074_s11  ;;  %p1080_p6 = scmp.lt.u32.totalorder %s1361_s7, %s2094_s0 }
  0x1e   : > { %p1081_p7 = scmp.lt.u32.totalorder %s1079_s21, %s1074_s11  ;;  %p1083_p13 = scmp.lt.u32.totalorder %s1074_s11, %s1361_s7 }
  0x1f   : > { %p1077_p4 = pnand %p1076_p3, %p1075_p2 }
  0x20   : > { %p1082_p10 = por %p1081_p7, %p1080_p6 }
  0x21   : > { %p1078_p5 = pneg %p1077_p4 }
  0x22   : > { %p1084_p12 = por %p1083_p13, %p1082_p10 }
  0x24   : > { %p1085_p1 = pnand %p1084_p12, %p1078_p5 }
  0x26   : > { %1088 = shalt.err (!%p1085_p1)
}
  0x27   : > { %s1089_s29 = scalar_lea.vmem %s1363_s9, 4864  ;;  %s1254_s30 = smov [#allocation2]  }
  0x28   : > { %p1090_p2 = scmp.ne.s32.totalorder %s1363_s9, %s1089_s29  ;;  %s1094_s5 = sshll.u32 %s1254_s30, 4  ;;  %s1095_s5 = int_to_ptr.vmem [resolvable:$false] %s1094_s5 }
  0x29   : > { %s1096_s6 = scalar_lea.vmem %s1095_s5, 9728  ;;  %p1097_p9 = scmp.lt.s32.totalorder %s1363_s9, %s1095_s5 }
  0x2a   : > { %p1092_p4 = pnand %p1090_p2, %p1076_p3  ;;  %p1098_p6 = scmp.lt.s32.totalorder %s1096_s6, %s1089_s29 }
  0x2c   : > { %p1093_p11 = pneg %p1092_p4  ;;  %p1099_p7 = por %p1098_p6, %p1097_p9 }
  0x2e   : > { %p1100_p10 = pnand %p1099_p7, %p1093_p11 }
  0x30   : > { %1103 = shalt.err (!%p1100_p10)
}
  0x31   : > { %s1255_s8 = smov 128   ;;  %s1256_s11 = smov 8  }
  0x32   : > { %928 = dma.hbm_to_vmem [thread:$0]  (!%p1354_p0), %s1361_s7, 4864, %s1363_s9, %s176_s10, %s1255_s8, %s1255_s8, %s1256_s11  }
  0x33   : > { %p221_p9 = scmp.lt.s32.totalorder %s1252_s17, 3  ;;  %s860_s18 = sshll.u32 %s1348_s28, 4 }
  0x34   : > { %s911_s19 = sshll.u32 %s1248_s16, 8  ;;  %p2105_p11 = scmp.ge.s32.totalorder %s1252_s17, 1 }
  0x35   : > { %s1409_s29 = scalar_lea.hbm %s2095_s1, %s911_s19  ;;  %s203_s30 = scalar_lea.vmem [#allocation5], %s860_s18 }
  0x36   : > { %p1402_p12 = pnand %p2105_p11, %p221_p9  ;;  %s213_s5 = sshll.u32 %s203_s30, 4  ;;  %s1411_s5 = int_to_ptr.vmem [resolvable:$true] %s213_s5 }
  0x37   : > { %s200_s7 = scalar_lea.sflag [#allocation6], %s1348_s28  ;;  %s1104_s9 = scalar_lea.hbm %s1409_s29, 256 }
  0x38   : > { %p1105_p1 = scmp.ne.s32.totalorder %s1409_s29, %s1104_s9  ;;  %s1109_s19 = scalar_lea.hbm %s2095_s1, 512 }
  0x39   : > { %p1110_p2 = scmp.lt.u32.totalorder %s1409_s29, %s2095_s1  ;;  %p1111_p4 = scmp.lt.u32.totalorder %s1109_s19, %s1104_s9 }
  0x3a   : > { %p1107_p5 = pnand %p1105_p1, %p1076_p3  ;;  %p1113_p7 = scmp.lt.u32.totalorder %s1104_s9, %s1409_s29 }
  0x3b   : > { %p1112_p6 = por %p1111_p4, %p1110_p2 }
  0x3c   : > { %p1108_p13 = pneg %p1107_p5 }
  0x3d   : > { %p1114_p10 = por %p1113_p7, %p1112_p6 }
  0x3f   : > { %p1115_p9 = pnand %p1114_p10, %p1108_p13 }
  0x41   : > { %1118 = shalt.err (!%p1115_p9)
}
  0x42   : > { %s1119_s18 = scalar_lea.vmem %s1411_s5, 256  ;;  %s1257_s30 = smov [#allocation5]  }
  0x43   : > { %p1120_p11 = scmp.ne.s32.totalorder %s1411_s5, %s1119_s18  ;;  %s1124_s10 = sshll.u32 %s1257_s30, 4  ;;  %s1125_s10 = int_to_ptr.vmem [resolvable:$false] %s1124_s10 }
  0x44   : > { %s1126_s6 = scalar_lea.vmem %s1125_s10, 512  ;;  %p1127_p8 = scmp.lt.s32.totalorder %s1411_s5, %s1125_s10 }
  0x45   : > { %p1122_p1 = pnand %p1120_p11, %p1076_p3  ;;  %p1128_p2 = scmp.lt.s32.totalorder %s1126_s6, %s1119_s18 }
  0x47   : > { %p1123_p5 = pneg %p1122_p1  ;;  %p1129_p4 = por %p1128_p2, %p1127_p8 }
  0x49   : > { %p1130_p6 = pnand %p1129_p4, %p1123_p5 }
  0x4b   : > { %1133 = shalt.err (!%p1130_p6)
}
  0x4c   : > { %931 = dma.hbm_to_vmem [thread:$0]  (!%p1354_p0), %s1409_s29, 256, %s1411_s5, %s200_s7, %s1255_s8, %s1255_s8, %s1256_s11  }
  0x4d   : > { %225 = sbr.rel (%p1402_p12) target bundleno = 247 (0xf7), region = 28  ;;  %s1445_s9 = sand.u32 (!%p1402_p12), 1, %s1236_s13  }
  0x4e   : > { %s916_s19 = smul.u32 (!%p1402_p12), 304, %s1445_s9  ;;  %s228_s22 = scalar_lea.sflag (!%p1402_p12), [#allocation3], %s1445_s9 }
  0x4f   : > { %p2107_p8 = scmp.ne.s32.totalorder (!%p1402_p12), %s2101_s24, 0 }
  0x50   : > { %s1449_s4 = scalar_lea.vmem (!%p1402_p12), [#allocation2], %s916_s19 }
  0x54   : > { %1215 = dma.done.wait (%p2107_p8), %s228_s22, 4864  }
  0x55   : > { %1217 = vsyncadd (%p2107_p8), %s228_s22, 4294962432  ;;  %s1456_s28 = sshll.u32 %s1445_s9, 4  ;;  %s237_s8 = scalar_lea.sflag [#allocation6], %s1445_s9 }
  0x56   : > { %s240_s11 = scalar_lea.vmem [#allocation5], %s1456_s28 }
  0x57   : > { %1219 = dma.done.wait (%p2107_p8), %s237_s8, 256  }
  0x58   : > { %1221 = vsyncadd (%p2107_p8), %s237_s8, 4294967040  ;;  %v1465_v0 = vld [vmem:[%s1449_s4] sm:$0xff]  ;;  %v1468_v1 = vld [vmem:[%s1449_s4 + $0x8] sm:$0xff]  ;;  %s272_s24 = scalar_lea.vmem [#allocation8], %s1456_s28  ;;  %s1993_s21 = scalar_lea.vmem [#allocation7], %s1456_s28 }
  0x59   : > { %v1471_v2 = vld [vmem:[%s1449_s4 + $0x10] sm:$0xff]  ;;  %v1474_v3 = vld [vmem:[%s1449_s4 + $0x18] sm:$0xff]  ;;  %v1481_v6 = vld [vmem:[%s1449_s4 + $0x20] sm:$0xff]  ;;  %s912_s29 = sshll.u32 %s1244_s15, 8  ;;  %s708_s5 = sshll.u32 %s272_s24, 4  ;;  %s2007_s5 = int_to_ptr.vmem [resolvable:$true] %s708_s5 }
  0x5a   : > { %v292_v4 = vmax.f32 %v1465_v0, %v1471_v2  ;;  %v293_v5 = vmax.f32 %v1468_v1, %v1474_v3  ;;  %v1484_v7 = vld [vmem:[%s1449_s4 + $0x28] sm:$0xff]  ;;  %v1487_v8 = vld [vmem:[%s1449_s4 + $0x30] sm:$0xff]  ;;  %v1490_v9 = vld [vmem:[%s1449_s4 + $0x38] sm:$0xff]  ;;  %s692_s7 = sshll.u32 %s1993_s21, 4  ;;  %s2005_s30 = scalar_lea.hbm %s2097_s3, %s912_s29  ;;  %s2014_s7 = int_to_ptr.vmem [resolvable:$true] %s692_s7 }
  0x5b   : > { %v1495_v12 = vld [vmem:[%s1449_s4 + $0x40] sm:$0xff]  ;;  %v1498_v13 = vld [vmem:[%s1449_s4 + $0x48] sm:$0xff]  ;;  %v1503_v16 = vld [vmem:[%s1449_s4 + $0x50] sm:$0xff]  ;;  %s2012_s6 = scalar_lea.hbm %s2096_s2, %s912_s29  ;;  %s679_s19 = scalar_lea.sflag [#allocation9], %s1445_s9 }
  0x5c   : > { %v297_v10 = vmax.f32 %v292_v4, %v1481_v6  ;;  %v298_v11 = vmax.f32 %v293_v5, %v1484_v7  ;;  %v1506_v17 = vld [vmem:[%s1449_s4 + $0x58] sm:$0xff]  ;;  %v1511_v20 = vld [vmem:[%s1449_s4 + $0x60] sm:$0xff]  ;;  %v1514_v21 = vld [vmem:[%s1449_s4 + $0x68] sm:$0xff]  ;;  %s1134_s22 = scalar_lea.vmem %s2007_s5, 256  ;;  %p2108_p3 = scmp.ne.s32.totalorder %s2102_s25, 0 }
  0x5d   : > { %v1519_v24 = vld [vmem:[%s1449_s4 + $0x70] sm:$0xff]  ;;  %v1522_v25 = vld [vmem:[%s1449_s4 + $0x78] sm:$0xff]  ;;  %v1527_v28 = vld [vmem:[%s1449_s4 + $0x80] sm:$0xff]  ;;  %p1135_p0 = scmp.ne.s32.totalorder %s2007_s5, %s1134_s22 }
  0x5e   : > { %v302_v14 = vmax.f32 %v297_v10, %v1487_v8  ;;  %v303_v15 = vmax.f32 %v298_v11, %v1490_v9  ;;  %v1530_v29 = vld [vmem:[%s1449_s4 + $0x88] sm:$0xff]  ;;  %v1535_v32 = vld [vmem:[%s1449_s4 + $0x90] sm:$0xff]  ;;  %v1538_v33 = vld [vmem:[%s1449_s4 + $0x98] sm:$0xff] }
  0x5f   : > { %v1543_v36 = vld [vmem:[%s1449_s4 + $0xa0] sm:$0xff]  ;;  %v1546_v37 = vld [vmem:[%s1449_s4 + $0xa8] sm:$0xff]  ;;  %v1551_v40 = vld [vmem:[%s1449_s4 + $0xb0] sm:$0xff]  ;;  %p1136_p12 = pnand %p1135_p0, %p2108_p3 }
  0x60   : > { %v307_v18 = vmax.f32 %v302_v14, %v1495_v12  ;;  %v308_v19 = vmax.f32 %v303_v15, %v1498_v13  ;;  %v1554_v41 = vld [vmem:[%s1449_s4 + $0xb8] sm:$0xff]  ;;  %v1559_v44 = vld [vmem:[%s1449_s4 + $0xc0] sm:$0xff]  ;;  %v1562_v45 = vld [vmem:[%s1449_s4 + $0xc8] sm:$0xff] }
  0x61   : > { %v1567_v48 = vld [vmem:[%s1449_s4 + $0xd0] sm:$0xff]  ;;  %v1570_v49 = vld [vmem:[%s1449_s4 + $0xd8] sm:$0xff]  ;;  %v1575_v52 = vld [vmem:[%s1449_s4 + $0xe0] sm:$0xff]  ;;  %p1137_p13 = pneg %p1136_p12 }
  0x62   : > { %v312_v22 = vmax.f32 %v307_v18, %v1503_v16  ;;  %v313_v23 = vmax.f32 %v308_v19, %v1506_v17  ;;  %v1578_v53 = vld [vmem:[%s1449_s4 + $0xe8] sm:$0xff]  ;;  %v1583_v56 = vld [vmem:[%s1449_s4 + $0xf0] sm:$0xff]  ;;  %v1586_v57 = vld [vmem:[%s1449_s4 + $0xf8] sm:$0xff]  ;;  %v1258_v19 = vmov 0.0  }
  0x63   : > { %v1592_v60 = vld [vmem:[%s240_s11] sm:$0xff]  ;;  %v1598_v62 = vld [vmem:[%s1449_s4 + $0x108] sm:$0xff]  ;;  %v1603_v5 = vld [vmem:[%s1449_s4 + $0x110] sm:$0xff] }
  0x64   : > { %v317_v26 = vmax.f32 %v312_v22, %v1511_v20  ;;  %v318_v27 = vmax.f32 %v313_v23, %v1514_v21  ;;  %v1595_v61 = vld [vmem:[%s1449_s4 + $0x100] sm:$0xff]  ;;  %v1606_v10 = vld [vmem:[%s1449_s4 + $0x118] sm:$0xff]  ;;  %vm387_vm0 = vcmp.eq.s32.totalorder %v1592_v60, 0  ;;  %v1615_v18 = vld [vmem:[%s1449_s4 + $0x128] sm:$0xff]  ;;  %vm401_vm1 = vcmp.eq.s32.totalorder %v1592_v60, 1 }
  0x65   : > { %v1612_v15 = vld [vmem:[%s1449_s4 + $0x120] sm:$0xff]  ;;  %v391_v22 = vsel %vm387_vm0, 0.8373, %v1258_v19  ;;  %v1621_v23 = vld [vmem:[%s240_s11 + $0x8] sm:$0xff]  ;;  %vm415_vm3 = vcmp.eq.s32.totalorder %v1592_v60, 2  ;;  %vm429_vm5 = vcmp.eq.s32.totalorder %v1592_v60, 3 }
  0x66   : > { %v322_v30 = vmax.f32 %v317_v26, %v1519_v24  ;;  %v323_v31 = vmax.f32 %v318_v27, %v1522_v25  ;;  %vm388_vm2 = vcmp.eq.s32.totalorder %v1621_v23, 0  ;;  %vm402_vm4 = vcmp.eq.s32.totalorder %v1621_v23, 1  ;;  %s1259_s4 = smov [#allocation8]  }
  0x67   : > { %vm443_vm6 = vcmp.eq.s32.totalorder %v1592_v60, 4  ;;  %vm416_vm7 = vcmp.eq.s32.totalorder %v1621_v23, 2  ;;  %vm430_vm8 = vcmp.eq.s32.totalorder %v1621_v23, 3  ;;  %vm457_vm9 = vcmp.eq.s32.totalorder %v1592_v60, 5  ;;  %s1138_s28 = sshll.u32 %s1259_s4, 4  ;;  %s1139_s28 = int_to_ptr.vmem [resolvable:$false] %s1138_s28 }
  0x68   : > { %v327_v34 = vmax.f32 %v322_v30, %v1527_v28  ;;  %v328_v35 = vmax.f32 %v323_v31, %v1530_v29  ;;  %vm471_vm10 = vcmp.eq.s32.totalorder %v1592_v60, 6  ;;  %vm444_vm11 = vcmp.eq.s32.totalorder %v1621_v23, 4  ;;  %s1140_s8 = scalar_lea.vmem %s1139_s28, 512  ;;  %p1141_p7 = scmp.lt.s32.totalorder %s2007_s5, %s1139_s28 }
  0x69   : > { %vm485_vm12 = vcmp.eq.s32.totalorder %v1592_v60, 7  ;;  %vm499_vm13 = vcmp.eq.s32.totalorder %v1592_v60, 8  ;;  %vm513_vm14 = vcmp.eq.s32.totalorder %v1592_v60, 9  ;;  %vm458_vm15 = vcmp.eq.s32.totalorder %v1621_v23, 5  ;;  %p1142_p10 = scmp.lt.s32.totalorder %s1140_s8, %s1134_s22 }
  0x6a   : > { %v332_v38 = vmax.f32 %v327_v34, %v1535_v32  ;;  %v333_v39 = vmax.f32 %v328_v35, %v1538_v33  ;;  %v405_v34 = vsel %vm401_vm1, 0.918, %v391_v22 }
  0x6b   : > { %p1143_p9 = por %p1142_p10, %p1141_p7 }
  0x6c   : > { %v337_v42 = vmax.f32 %v332_v38, %v1543_v36  ;;  %v338_v43 = vmax.f32 %v333_v39, %v1546_v37 }
  0x6d   : > { %p1144_p11 = pnand %p1143_p9, %p1137_p13 }
  0x6e   : > { %v342_v46 = vmax.f32 %v337_v42, %v1551_v40  ;;  %v343_v47 = vmax.f32 %v338_v43, %v1554_v41 }
  0x70   : > { %v347_v50 = vmax.f32 %v342_v46, %v1559_v44  ;;  %v348_v51 = vmax.f32 %v343_v47, %v1562_v45 }
  0x72   : > { %v352_v54 = vmax.f32 %v347_v50, %v1567_v48  ;;  %v353_v55 = vmax.f32 %v348_v51, %v1570_v49 }
  0x74   : > { %v357_v58 = vmax.f32 %v352_v54, %v1575_v52  ;;  %v358_v59 = vmax.f32 %v353_v55, %v1578_v53 }
  0x76   : > { %v362_v63 = vmax.f32 %v357_v58, %v1583_v56  ;;  %v363_v4 = vmax.f32 %v358_v59, %v1586_v57 }
  0x78   : > { %v367_v11 = vmax.f32 %v362_v63, %v1595_v61  ;;  %v368_v14 = vmax.f32 %v363_v4, %v1598_v62 }
  0x7a   : > { %v372_v26 = vmax.f32 %v367_v11, %v1603_v5  ;;  %v373_v27 = vmax.f32 %v368_v14, %v1606_v10 }
  0x7c   : > { %v1627_v30 = vmax.f32 %v372_v26, %v1612_v15  ;;  %v1630_v31 = vmax.f32 %v373_v27, %v1615_v18 }
  0x7e   : > { %v379_v35 = vsub.f32 %v1465_v0, %v1627_v30  ;;  %v380_v38 = vsub.f32 %v1468_v1, %v1630_v31  ;;  %v393_v39 = vsub.f32 %v1471_v2, %v1627_v30  ;;  %v394_v42 = vsub.f32 %v1474_v3, %v1630_v31 }
  0x7f   : > { %v407_v43 = vsub.f32 %v1481_v6, %v1627_v30  ;;  %v1649_v46 = vsub.f32 %v1484_v7, %v1630_v31  ;;  %v419_v0 = vsel %vm415_vm3, 0.866, %v405_v34  ;;  %v421_v3 = vsub.f32 %v1487_v8, %v1627_v30 }
  0x80   : > { %v381_v47 = vmul.f32 1.442695, %v379_v35  ;;  %v383_v1 = vmul.f32 1.442695, %v380_v38  ;;  %v389_v2 = vsel %vm387_vm0, %v379_v35, 0.0  ;;  %v1669_v59 = vsub.f32 %v1490_v9, %v1630_v31 }
  0x81   : > { %v395_v50 = vmul.f32 1.442695, %v393_v39  ;;  %v397_v51 = vmul.f32 1.442695, %v394_v42  ;;  %v403_v6 = vsel %vm401_vm1, %v393_v39, %v389_v2  ;;  %v392_v7 = vsel %vm388_vm2, 0.8373, %v1258_v19 }
  0x82   : > { %994 = vpow2.f32 %v381_v47  ;;  %v409_v54 = vmul.f32 1.442695, %v407_v43  ;;  %v433_v55 = vsel %vm429_vm5, 1.0345, %v419_v0  ;;  %v411_v58 = vmul.f32 1.442695, %v1649_v46 }
  0x83   : > { %996 = vpow2.f32 %v383_v1  ;;  %v417_v8 = vsel %vm415_vm3, %v407_v43, %v403_v6  ;;  %v423_v63 = vmul.f32 1.442695, %v421_v3  ;;  %v435_v4 = vsub.f32 %v1495_v12, %v1627_v30 }
  0x84   : > { %998 = vpow2.f32 %v395_v50  ;;  %v406_v11 = vsel %vm402_vm4, 0.918, %v392_v7  ;;  %v447_v14 = vsel %vm443_vm6, 1.0166, %v433_v55  ;;  %v449_v19 = vsub.f32 %v1503_v16, %v1627_v30 }
  0x85   : > { %1000 = vpow2.f32 %v397_v51  ;;  %v431_v9 = vsel %vm429_vm5, %v421_v3, %v417_v8  ;;  %v437_v22 = vmul.f32 1.442695, %v435_v4  ;;  %v463_v12 = vsub.f32 %v1511_v20, %v1627_v30 }
  0x86   : > { %1002 = vpow2.f32 %v409_v54  ;;  %v425_v26 = vmul.f32 1.442695, %v1669_v59  ;;  %v420_v27 = vsel %vm416_vm7, 0.866, %v406_v11  ;;  %v451_v16 = vmul.f32 1.442695, %v449_v19 }
  0x87   : > { %1004 = vpow2.f32 %v411_v58  ;;  %v390_v34 = vsel %vm388_vm2, %v380_v38, 0.0  ;;  %v445_v20 = vsel %vm443_vm6, %v435_v4, %v431_v9  ;;  %v461_v35 = vsel %vm457_vm9, 0.9969, %v447_v14 }
  0x88   : > { %1006 = vpow2.f32 %v423_v63  ;;  %v477_v39 = vsub.f32 %v1519_v24, %v1627_v30  ;;  %v465_v43 = vmul.f32 1.442695, %v463_v12  ;;  %v1700_v0 = vsub.f32 %v1527_v28, %v1627_v30 }
  0x89   : > { %1008 = vpow2.f32 %v437_v22  ;;  %v1704_v47 = vsub.f32 %v1535_v32, %v1627_v30  ;;  %v1708_v38 = vsub.f32 %v1498_v13, %v1630_v31  ;;  %v459_v24 = vsel %vm457_vm9, %v449_v19, %v445_v20 }
  0x8a   : > { %1010 = vpow2.f32 %v425_v26  ;;  %v479_v1 = vmul.f32 1.442695, %v477_v39  ;;  %v493_v28 = vmul.f32 1.442695, %v1700_v0  ;;  %v1717_v32 = vsub.f32 %v1543_v36, %v1627_v30 }
  0x8b   : > { %1012 = vpow2.f32 %v451_v16  ;;  %v404_v13 = vsel %vm402_vm4, %v394_v42, %v390_v34  ;;  %v434_v50 = vsel %vm430_vm8, 1.0345, %v420_v27  ;;  %v475_v51 = vsel %vm471_vm10, 0.9754, %v461_v35 }
  0x8c   : > { %v995_v2 = vpop.eup %994  ;;  %v1728_v7 = vsub.f32 %v1506_v17, %v1630_v31  ;;  %1014 = vpow2.f32 %v465_v43  ;;  %v507_v36 = vmul.f32 1.442695, %v1704_v47  ;;  %v1733_v54 = vsub.f32 %v1551_v40, %v1627_v30 }
  0x8d   : > { %v997_v3 = vpop.eup %996  ;;  %v439_v58 = vmul.f32 1.442695, %v1708_v38  ;;  %v473_v8 = vsel %vm471_vm10, %v463_v12, %v459_v24  ;;  %1016 = vpow2.f32 %v479_v1  ;;  %v521_v17 = vmul.f32 1.442695, %v1717_v32 }
  0x8e   : > { %v999_v6 = vpop.eup %998  ;;  %1018 = vpow2.f32 %v493_v28  ;;  %v1741_v11 = vsub.f32 %v1559_v44, %v1627_v30  ;;  %v489_v19 = vsel %vm485_vm12, 1.0489, %v475_v51  ;;  %v1748_v9 = vsub.f32 %v1567_v48, %v1627_v30 }
  0x8f   : > { %v1001_v42 = vpop.eup %1000  ;;  %v399_v55 = vadd.f32 %v999_v6, %v995_v2  ;;  %v418_v12 = vsel %vm416_vm7, %v1649_v46, %v404_v13  ;;  %1020 = vpow2.f32 %v507_v36  ;;  %v535_v44 = vmul.f32 1.442695, %v1733_v54 }
  0x90   : > { %v1003_v63 = vpop.eup %1002  ;;  %v400_v4 = vadd.f32 %v1001_v42, %v997_v3  ;;  %v1756_v26 = vsub.f32 %v1575_v52, %v1627_v30  ;;  %1022 = vpow2.f32 %v439_v58  ;;  %v453_v16 = vmul.f32 1.442695, %v1728_v7 }
  0x91   : > { %v1005_v14 = vpop.eup %1004  ;;  %v413_v40 = vadd.f32 %v1003_v63, %v399_v55  ;;  %v487_v48 = vsel %vm485_vm12, %v477_v39, %v473_v8  ;;  %1024 = vpow2.f32 %v521_v17  ;;  %v549_v35 = vmul.f32 1.442695, %v1741_v11 }
  0x92   : > { %v1007_v22 = vpop.eup %1006  ;;  %v414_v20 = vadd.f32 %v1005_v14, %v400_v4  ;;  %v1764_v46 = vsub.f32 %v1583_v56, %v1627_v30  ;;  %v1768_v52 = vsel %vm444_vm11, 1.0166, %v434_v50  ;;  %v563_v2 = vmul.f32 1.442695, %v1748_v9 }
  0x93   : > { %v427_v27 = vadd.f32 %v1007_v22, %v413_v40  ;;  %v1009_v34 = vpop.eup %1008  ;;  %v503_v39 = vsel %vm499_vm13, 0.8786, %v489_v19  ;;  %1026 = vpow2.f32 %v535_v44  ;;  %v577_v28 = vmul.f32 1.442695, %v1756_v26 }
  0x94   : > { %v1011_v43 = vpop.eup %1010  ;;  %v432_v56 = vsel %vm430_vm8, %v1669_v59, %v418_v12  ;;  %1028 = vpow2.f32 %v453_v16  ;;  %v501_v13 = vsel %vm499_vm13, %v1700_v0, %v487_v48  ;;  %v591_v6 = vmul.f32 1.442695, %v1764_v46 }
  0x95   : > { %v441_v1 = vadd.f32 %v1009_v34, %v427_v27  ;;  %v1013_v24 = vpop.eup %1012  ;;  %v428_v51 = vadd.f32 %v1011_v43, %v414_v20  ;;  %1030 = vpow2.f32 %v549_v35  ;;  %v1784_v36 = vsub.f32 %v1595_v61, %v1627_v30 }
  0x96   : > { %v1015_v50 = vpop.eup %1014  ;;  %1032 = vpow2.f32 %v563_v2  ;;  %v1789_v59 = vsub.f32 %v1514_v21, %v1630_v31  ;;  %v1793_v0 = vsub.f32 %v1522_v25, %v1630_v31  ;;  %v1797_v8 = vsub.f32 %v1603_v5, %v1627_v30 }
  0x97   : > { %v455_v3 = vadd.f32 %v1013_v24, %v441_v1  ;;  %v1017_v42 = vpop.eup %1016  ;;  %1034 = vpow2.f32 %v577_v28  ;;  %v1801_v61 = vsub.f32 %v1530_v29, %v1630_v31  ;;  %v1805_v63 = vsub.f32 %v1538_v33, %v1630_v31 }
  0x98   : > { %v1019_v58 = vpop.eup %1018  ;;  %v467_v4 = vmul.f32 1.442695, %v1789_v59  ;;  %v481_v25 = vmul.f32 1.442695, %v1793_v0  ;;  %v1811_v17 = vsub.f32 %v1546_v37, %v1630_v31  ;;  %1036 = vpow2.f32 %v591_v6 }
  0x99   : > { %v469_v55 = vadd.f32 %v1015_v50, %v455_v3  ;;  %v1021_v14 = vpop.eup %1020  ;;  %v605_v5 = vmul.f32 1.442695, %v1784_v36  ;;  %v1816_v29 = vsub.f32 %v1612_v15, %v1627_v30  ;;  %v495_v33 = vmul.f32 1.442695, %v1801_v61 }
  0x9a   : > { %v1023_v40 = vpop.eup %1022  ;;  %1038 = vpow2.f32 %v467_v4  ;;  %v509_v22 = vmul.f32 1.442695, %v1805_v63  ;;  %v1822_v12 = vsub.f32 %v1554_v41, %v1630_v31  ;;  %v515_v44 = vsel %vm513_vm14, %v1704_v47, %v501_v13 }
  0x9b   : > { %v483_v21 = vadd.f32 %v1017_v42, %v469_v55  ;;  %v1025_v37 = vpop.eup %1024  ;;  %vm527_vm0 = vcmp.eq.s32.totalorder %v1592_v60, 10  ;;  %v619_v15 = vmul.f32 1.442695, %v1797_v8  ;;  %1040 = vpow2.f32 %v481_v25 }
  0x9c   : > { %1042 = vpow2.f32 %v495_v33  ;;  %v523_v27 = vmul.f32 1.442695, %v1811_v17  ;;  %v1832_v16 = vsub.f32 %v1562_v45, %v1630_v31  ;;  %v442_v48 = vadd.f32 %v1023_v40, %v428_v51 }
  0x9d   : > { %v497_v19 = vadd.f32 %v1019_v58, %v483_v21  ;;  %v1027_v41 = vpop.eup %1026  ;;  %v446_v34 = vsel %vm444_vm11, %v1708_v38, %v432_v56  ;;  %1044 = vpow2.f32 %v605_v5  ;;  %v633_v47 = vmul.f32 1.442695, %v1816_v29 }
  0x9e   : > { %v1029_v20 = vpop.eup %1028  ;;  %1046 = vpow2.f32 %v509_v22  ;;  %v537_v43 = vmul.f32 1.442695, %v1822_v12  ;;  %v1841_v1 = vsub.f32 %v1570_v49, %v1630_v31  ;;  %v517_v2 = vsel %vm513_vm14, 1.0023, %v503_v39 }
  0x9f   : > { %v511_v30 = vadd.f32 %v1021_v14, %v497_v19  ;;  %v1031_v45 = vpop.eup %1030  ;;  %v529_v38 = vsel %vm527_vm0, %v1717_v32, %v515_v44  ;;  %vm541_vm1 = vcmp.eq.s32.totalorder %v1592_v60, 11  ;;  %1048 = vpow2.f32 %v619_v15 }
  0xa0   : > { %v1033_v24 = vpop.eup %1032  ;;  %1050 = vpow2.f32 %v523_v27  ;;  %v551_v56 = vmul.f32 1.442695, %v1832_v16  ;;  %v1852_v49 = vsub.f32 %v1578_v53, %v1630_v31  ;;  %v460_v39 = vsel %vm458_vm15, %v1728_v7, %v446_v34 }
  0xa1   : > { %v525_v35 = vadd.f32 %v1025_v37, %v511_v30  ;;  %v1035_v3 = vpop.eup %1034  ;;  %1052 = vpow2.f32 %v633_v47  ;;  %v456_v13 = vadd.f32 %v1029_v20, %v442_v48  ;;  %vm472_vm2 = vcmp.eq.s32.totalorder %v1621_v23, 6 }
  0xa2   : > { %1054 = vpow2.f32 %v537_v43  ;;  %v565_v50 = vmul.f32 1.442695, %v1841_v1  ;;  %v1861_v51 = vsub.f32 %v1586_v57, %v1630_v31  ;;  %v1037_v6 = vpop.eup %1036  ;;  %v462_v53 = vsel %vm458_vm15, 0.9969, %v1768_v52 }
  0xa3   : > { %v539_v28 = vadd.f32 %v1027_v41, %v525_v35  ;;  %v543_v7 = vsel %vm541_vm1, %v1733_v54, %v529_v38  ;;  %vm555_vm3 = vcmp.eq.s32.totalorder %v1592_v60, 12  ;;  %vm569_vm4 = vcmp.eq.s32.totalorder %v1592_v60, 13 }
  0xa4   : > { %v1039_v42 = vpop.eup %1038  ;;  %1056 = vpow2.f32 %v551_v56  ;;  %v579_v58 = vmul.f32 1.442695, %v1852_v49  ;;  %v1874_v57 = vsub.f32 %v1598_v62, %v1630_v31  ;;  %v531_v52 = vsel %vm527_vm0, 0.9539, %v517_v2 }
  0xa5   : > { %v553_v32 = vadd.f32 %v1031_v45, %v539_v28  ;;  %v1041_v21 = vpop.eup %1040  ;;  %v470_v4 = vadd.f32 %v1039_v42, %v456_v13  ;;  %v474_v54 = vsel %vm472_vm2, %v1789_v59, %v460_v39  ;;  %vm486_vm5 = vcmp.eq.s32.totalorder %v1621_v23, 7 }
  0xa6   : > { %v1043_v25 = vpop.eup %1042  ;;  %1058 = vpow2.f32 %v565_v50  ;;  %v593_v5 = vmul.f32 1.442695, %v1861_v51  ;;  %v1885_v62 = vsub.f32 %v1606_v10, %v1630_v31  ;;  %v557_v40 = vsel %vm555_vm3, %v1741_v11, %v543_v7 }
  0xa7   : > { %v567_v55 = vadd.f32 %v1033_v24, %v553_v32  ;;  %v1045_v33 = vpop.eup %1044  ;;  %v484_v19 = vadd.f32 %v1041_v21, %v470_v4  ;;  %vm500_vm6 = vcmp.eq.s32.totalorder %v1621_v23, 8  ;;  %v1893_v59 = vsub.f32 %v1615_v18, %v1630_v31 }
  0xa8   : > { %v1047_v22 = vpop.eup %1046  ;;  %v488_v44 = vsel %vm486_vm5, %v1793_v0, %v474_v54  ;;  %1060 = vpow2.f32 %v579_v58  ;;  %v607_v10 = vmul.f32 1.442695, %v1874_v57  ;;  %v545_v11 = vsel %vm541_vm1, 0.9843, %v531_v52 }
  0xa9   : > { %v581_v14 = vadd.f32 %v1035_v3, %v567_v55  ;;  %v1049_v15 = vpop.eup %1048  ;;  %vm583_vm7 = vcmp.eq.s32.totalorder %v1592_v60, 14  ;;  %v476_v30 = vsel %vm472_vm2, 0.9754, %v462_v53  ;;  %v498_v18 = vadd.f32 %v1043_v25, %v484_v19 }
  0xaa   : > { %v1051_v31 = vpop.eup %1050  ;;  %vm514_vm8 = vcmp.eq.s32.totalorder %v1621_v23, 9  ;;  %1062 = vpow2.f32 %v593_v5  ;;  %v621_v0 = vmul.f32 1.442695, %v1885_v62  ;;  %v571_v48 = vsel %vm569_vm4, %v1748_v9, %v557_v40 }
  0xab   : > { %v595_v37 = vadd.f32 %v1037_v6, %v581_v14  ;;  %v1053_v41 = vpop.eup %1052  ;;  %v502_v34 = vsel %vm500_vm6, %v1801_v61, %v488_v44  ;;  %v512_v47 = vadd.f32 %v1047_v22, %v498_v18  ;;  %v635_v20 = vmul.f32 1.442695, %v1893_v59 }
  0xac   : > { %v1055_v35 = vpop.eup %1054  ;;  %v559_v43 = vsel %vm555_vm3, 1.1116, %v545_v11  ;;  %v490_v2 = vsel %vm486_vm5, 1.0489, %v476_v30  ;;  %1064 = vpow2.f32 %v607_v10  ;;  %vm597_vm9 = vcmp.eq.s32.totalorder %v1592_v60, 15 }
  0xad   : > { %v609_v27 = vadd.f32 %v1045_v33, %v595_v37  ;;  %v526_v38 = vadd.f32 %v1051_v31, %v512_v47  ;;  %vm528_vm10 = vcmp.eq.s32.totalorder %v1621_v23, 10  ;;  %v585_v61 = vsel %vm583_vm7, %v1756_v26, %v571_v48 }
  0xae   : > { %v1057_v9 = vpop.eup %1056  ;;  %v516_v28 = vsel %vm514_vm8, %v1805_v63, %v502_v34  ;;  %1066 = vpow2.f32 %v621_v0  ;;  %v573_v56 = vsel %vm569_vm4, 0.9037, %v559_v43  ;;  %v504_v3 = vsel %vm500_vm6, 0.8786, %v490_v2 }
  0xaf   : > { %v623_v45 = vadd.f32 %v1049_v15, %v609_v27  ;;  %v540_v39 = vadd.f32 %v1055_v35, %v526_v38  ;;  %1068 = vpow2.f32 %v635_v20  ;;  %vm611_vm11 = vcmp.eq.s32.totalorder %v1592_v60, 16 }
  0xb0   : > { %v1059_v13 = vpop.eup %1058  ;;  %v599_v26 = vsel %vm597_vm9, %v1764_v46, %v585_v61  ;;  %v530_v63 = vsel %vm528_vm10, %v1811_v17, %v516_v28  ;;  %vm542_vm12 = vcmp.eq.s32.totalorder %v1621_v23, 11  ;;  %v587_v6 = vsel %vm583_vm7, 1.0865, %v573_v56 }
  0xb1   : > { %v637_v24 = vadd.f32 %v1053_v41, %v623_v45  ;;  %v554_v32 = vadd.f32 %v1057_v9, %v540_v39  ;;  %v518_v53 = vsel %vm514_vm8, 1.0023, %v504_v3  ;;  %v613_v46 = vsel %vm611_vm11, %v1784_v36, %v599_v26 }
  0xb2   : > { %v1061_v50 = vpop.eup %1060  ;;  %vm625_vm13 = vcmp.eq.s32.totalorder %v1592_v60, 17  ;;  %v544_v17 = vsel %vm542_vm12, %v1822_v12, %v530_v63  ;;  %vm556_vm14 = vcmp.eq.s32.totalorder %v1621_v23, 12  ;;  %v601_v55 = vsel %vm597_vm9, 1.0955, %v587_v6 }
  0xb3   : > { %1070 = vlog2.f32 %v637_v24  ;;  %v568_v7 = vadd.f32 %v1059_v13, %v554_v32  ;;  %v532_v58 = vsel %vm528_vm10, 0.9539, %v518_v53  ;;  %vm639_vm15 = vcmp.eq.s32.totalorder %v1592_v60, 18 }
  0xb4   : > { %v1063_v42 = vpop.eup %1062  ;;  %v627_v36 = vsel %vm625_vm13, %v1797_v8, %v613_v46  ;;  %v558_v12 = vsel %vm556_vm14, %v1832_v16, %v544_v17  ;;  %vm570_vm0 = vcmp.eq.s32.totalorder %v1621_v23, 13  ;;  %v615_v25 = vsel %vm611_vm11, 1.0865, %v601_v55 }
  0xb5   : > { %v582_v21 = vadd.f32 %v1061_v50, %v568_v7  ;;  %v546_v14 = vsel %vm542_vm12, 0.9843, %v532_v58  ;;  %v641_v8 = vsel %vm639_vm15, %v1816_v29, %v627_v36  ;;  %v572_v16 = vsel %vm570_vm0, %v1841_v1, %v558_v12 }
  0xb6   : > { %v1065_v52 = vpop.eup %1064  ;;  %vm584_vm1 = vcmp.eq.s32.totalorder %v1621_v23, 14  ;;  %v629_v19 = vsel %vm625_vm13, 1.1529, %v615_v25  ;;  %v560_v37 = vsel %vm556_vm14, 1.1116, %v546_v14  ;;  %vm651_vm2 = vcmp.ne.s32.totalorder %v1592_v60, 255 }
  0xb7   : > { %v596_v4 = vadd.f32 %v1063_v42, %v582_v21  ;;  %v586_v29 = vsel %vm584_vm1, %v1852_v49, %v572_v16  ;;  %vm598_vm3 = vcmp.eq.s32.totalorder %v1621_v23, 15  ;;  %v643_v15 = vsel %vm639_vm15, 1.0507, %v629_v19 }
  0xb8   : > { %v1067_v54 = vpop.eup %1066  ;;  %v574_v11 = vsel %vm570_vm0, 0.9037, %v560_v37  ;;  %v600_v30 = vsel %vm598_vm3, %v1861_v51, %v586_v29  ;;  %vm612_vm6 = vcmp.eq.s32.totalorder %v1621_v23, 16  ;;  %vm626_vm7 = vcmp.eq.s32.totalorder %v1621_v23, 17 }
  0xb9   : > { %v1069_v5 = vpop.eup %1068  ;;  %v610_v33 = vadd.f32 %v1065_v52, %v596_v4  ;;  %v588_v49 = vsel %vm584_vm1, 1.0865, %v574_v11  ;;  %v614_v27 = vsel %vm612_vm6, %v1874_v57, %v600_v30  ;;  %vm640_vm8 = vcmp.eq.s32.totalorder %v1621_v23, 18 }
  0xba   : > { %v602_v60 = vsel %vm598_vm3, 1.0955, %v588_v49  ;;  %v628_v51 = vsel %vm626_vm7, %v1885_v62, %v614_v27  ;;  %vm652_vm9 = vcmp.ne.s32.totalorder %v1621_v23, 255 }
  0xbb   : > { %v624_v44 = vadd.f32 %v1067_v54, %v610_v33  ;;  %v616_v0 = vsel %vm612_vm6, 1.0865, %v602_v60  ;;  %v642_v48 = vsel %vm640_vm8, %v1893_v59, %v628_v51 }
  0xbc   : > { %v630_v57 = vsel %vm626_vm7, 1.1529, %v616_v0 }
  0xbd   : > { %v1071_v40 = vpop.eup %1070  ;;  %v638_v1 = vadd.f32 %v1069_v5, %v624_v44  ;;  %v644_v20 = vsel %vm640_vm8, 1.0507, %v630_v57 }
  0xbe   : > { %v646_v22 = vmul.f32 0.6931472, %v1071_v40 }
  0xbf   : > { %1072 = vlog2.f32 %v638_v1 }
  0xc0   : > { %v649_v10 = vsub.f32 %v646_v22, %v641_v8 }
  0xc2   : > { %vm653_vm4 = vcmp.ge.f32.partialorder %v649_v10, 0.51082563 }
  0xc3   : > { %vm655_vm5 = vmand %vm651_vm2, %vm653_vm4 }
  0xc4   : > { %v657_v18 = vsel %vm655_vm5, %v643_v15, 0.0 }
  0xc5   : > { %v661_v31 = vmul.f32 %v657_v18, %v649_v10  ;;  %671 = vst [vmem:[%s272_s24] sm:$0xff] %v657_v18 }
  0xc7   : > { %665 = vst [vmem:[%s1993_s21] sm:$0xff] %v661_v31 }
  0xc9   : > { %v1073_v41 = vpop.eup %1072 }
  0xca   : > { %v648_v34 = vmul.f32 0.6931472, %v1073_v41 }
  0xcc   : > { %v650_v47 = vsub.f32 %v648_v34, %v642_v48 }
  0xce   : > { %vm654_vm10 = vcmp.ge.f32.partialorder %v650_v47, 0.51082563 }
  0xcf   : > { %vm656_vm11 = vmand %vm652_vm9, %vm654_vm10 }
  0xd0   : > { %v658_v62 = vsel %vm656_vm11, %v644_v20, 0.0 }
  0xd1   : > { %v662_v59 = vmul.f32 %v658_v62, %v650_v47  ;;  %672 = vst [vmem:[%s272_s24 + $0x8] sm:$0xff] %v658_v62 }
  0xd2   : > { %1147 = shalt.err (!%p1144_p11)
}
  0xd3   : > { %s1148_s11 = scalar_lea.hbm %s2005_s30, 256  ;;  %s1152_s23 = scalar_lea.hbm %s2097_s3, 512 }
  0xd4   : > { %p1149_p1 = scmp.ne.s32.totalorder %s2005_s30, %s1148_s11  ;;  %p1153_p4 = scmp.lt.u32.totalorder %s2005_s30, %s2097_s3 }
  0xd5   : > { %p1154_p6 = scmp.lt.u32.totalorder %s1152_s23, %s1148_s11  ;;  %p1156_p0 = scmp.lt.u32.totalorder %s1148_s11, %s2005_s30 }
  0xd6   : > { %p1150_p5 = pnand %p1149_p1, %p2108_p3 }
  0xd7   : > { %p1155_p8 = por %p1154_p6, %p1153_p4 }
  0xd8   : > { %p1151_p2 = pneg %p1150_p5 }
  0xd9   : > { %p1157_p12 = por %p1156_p0, %p1155_p8 }
  0xdb   : > { %p1158_p13 = pnand %p1157_p12, %p1151_p2 }
  0xdd   : > { %1161 = shalt.err (!%p1158_p13)
}
  0xde   : > { %s1260_s10 = smov 128   ;;  %s1261_s22 = smov 8   ;;  %666 = vst [vmem:[%s1993_s21 + $0x8] sm:$0xff] %v662_v59 }
  0xdf   : > { %922 = dma.vmem_to_hbm [thread:$0]  (%p2108_p3), %s2007_s5, 256, %s2005_s30, %s679_s19, %s1260_s10, %s1260_s10, %s1261_s22  }
  0xe0   : > { %s674_s4 = scalar_lea.sflag [#allocation4], %s1445_s9  ;;  %s1162_s28 = scalar_lea.vmem %s2014_s7, 256 }
  0xe1   : > { %p1163_p7 = scmp.ne.s32.totalorder %s2014_s7, %s1162_s28  ;;  %s1262_s8 = smov [#allocation7]  }
  0xe2   : > { %s1166_s11 = sshll.u32 %s1262_s8, 4  ;;  %s1167_s11 = int_to_ptr.vmem [resolvable:$false] %s1166_s11 }
  0xe3   : > { %p1164_p10 = pnand %p1163_p7, %p2108_p3  ;;  %s1168_s24 = scalar_lea.vmem %s1167_s11, 512 }
  0xe4   : > { %p1169_p11 = scmp.lt.s32.totalorder %s2014_s7, %s1167_s11  ;;  %p1170_p1 = scmp.lt.s32.totalorder %s1168_s24, %s1162_s28 }
  0xe5   : > { %p1165_p9 = pneg %p1164_p10 }
  0xe6   : > { %p1171_p5 = por %p1170_p1, %p1169_p11 }
  0xe8   : > { %p1172_p2 = pnand %p1171_p5, %p1165_p9 }
  0xea   : > { %1175 = shalt.err (!%p1172_p2)
}
  0xeb   : > { %s1176_s21 = scalar_lea.hbm %s2012_s6, 256  ;;  %s1180_s19 = scalar_lea.hbm %s2096_s2, 512 }
  0xec   : > { %p1177_p4 = scmp.ne.s32.totalorder %s2012_s6, %s1176_s21  ;;  %p1181_p0 = scmp.lt.u32.totalorder %s2012_s6, %s2096_s2 }
  0xed   : > { %p1182_p12 = scmp.lt.u32.totalorder %s1180_s19, %s1176_s21  ;;  %p1184_p7 = scmp.lt.u32.totalorder %s1176_s21, %s2012_s6 }
  0xee   : > { %p1178_p6 = pnand %p1177_p4, %p2108_p3 }
  0xef   : > { %p1183_p13 = por %p1182_p12, %p1181_p0 }
  0xf0   : > { %p1179_p8 = pneg %p1178_p6 }
  0xf1   : > { %p1185_p10 = por %p1184_p7, %p1183_p13 }
  0xf3   : > { %p1186_p9 = pnand %p1185_p10, %p1179_p8 }
  0xf5   : > { %1189 = shalt.err (!%p1186_p9)
}
  0xf6   : > { %921 = dma.vmem_to_hbm [thread:$0]  (%p2108_p3), %s2014_s7, 256, %s2012_s6, %s674_s4, %s1260_s10, %s1260_s10, %s1261_s22  }
  0xf7 PF: > { %s723_s18 = sand.u32 1, %s1232_s12   ;;  %p2109_p11 = scmp.ne.s32.totalorder %s2103_s27, 0 }
  0xf8   : > { %p2110_p1 = scmp.ge.s32.totalorder %s1252_s17, 2  ;;  %s724_s15 = scalar_lea.sflag [#allocation4], %s723_s18 }
  0xfa   : > { %p933_p5 = pnand %p2110_p1, %p2109_p11 }
  0xfc   : > { %1223 = dma.done.wait (!%p933_p5), %s724_s15, 256  }
  0xfd   : > { %1225 = vsyncadd (!%p933_p5), %s724_s15, 4294967040  ;;  %s733_s25 = scalar_lea.sflag [#allocation9], %s723_s18 }
  0xfe   : > { %1227 = dma.done.wait (!%p933_p5), %s733_s25, 256  }
  0xff   : > { %1229 = vsyncadd (!%p933_p5), %s733_s25, 4294967040  ;;  %s26_s17 = sadd.s32 1, %s1252_s17   ;;  %s2111_s12 = smov %s1236_s13 }
 0x100   : > { %p23_p2 = scmp.ge.s32.totalorder %s26_s17, 4   ;;  %s2112_s13 = smov %s1240_s14 }
 0x101   : > { %s2113_s14 = smov %s1339_s26  ;;  %s2114_s15 = smov %s1248_s16 }
 0x102   : > { %s2115_s16 = smov %s2117_s20  ;;  %25 = sbr.rel (!%p23_p2) target bundleno = 10 (0xa), region = 125 }
 0x109   :  { %738 = vsyncpa [#allocation3], 1 }
 0x10a   :  { %740 = vsyncpa [#allocation3 + $0x1], 1 }
 0x10b   :  { %741 = vsyncpa [#allocation6], 1 }
 0x10c   :  { %743 = vsyncpa [#allocation6 + $0x1], 1 }
 0x10d   :  { %744 = vsyncpa [#allocation4], 1 }
 0x10e   :  { %746 = vsyncpa [#allocation4 + $0x1], 1 }
 0x10f   :  { %747 = vsyncpa [#allocation9], 1 }
 0x110   :  { %749 = vsyncpa [#allocation9 + $0x1], 1 }

</bundles_post_ra>
